<compile_context>
chip_gen: v5e
topology: v5e:2x2
jax: 0.10.0
libtpu: 0.0.40
codegen_flags: <defaults>
</compile_context>

<pallas_src>
import functools
import math

import jax
import jax.numpy as jnp
from jax import lax
from jax.experimental import pallas as pl
from jax.experimental.pallas import tpu as pltpu


def _layernorm(x, scale, shift, eps=1e-5):
    # x: (rows, E); scale/shift: (1, E); unbiased=False variance (matches torch)
    mean = jnp.mean(x, axis=-1, keepdims=True)
    var = jnp.mean((x - mean) ** 2, axis=-1, keepdims=True)
    return (x - mean) * lax.rsqrt(var + eps) * scale + shift


def _gelu(x):
    # exact tanh-approx GELU from the reference module (f32 elementwise -> EUP tanh)
    c = math.sqrt(2.0 / math.pi)
    return 0.5 * x * (1.0 + jnp.tanh(c * (x + 0.044715 * x * x * x)))


def transformer_block_kernel(
    x_ref,                               # (1, Tp, E)  full (padded) sequence for this batch
    n1s_ref, n1b_ref,                    # (1, E)      LayerNorm1 scale / shift
    wqkv_ref,                            # (E, 3E)     fused Q|K|V weight (bf16, Q pre-scaled)
    wo_ref, bo_ref,                      # (E, E) bf16, (1, E) f32
    n2s_ref, n2b_ref,                    # (1, E)      LayerNorm2 scale / shift
    w1_ref, b1_ref,                      # (E, 4E) bf16, (1, 4E) f32
    w2_ref, b2_ref,                      # (4E, E) bf16, (1, E) f32
    o_ref,                               # (1, TQ, E)
    q_s, k_s, v_s,                       # (Tp, E) bf16 VMEM scratch (per-batch Q/K/V)
    ctx_s,                               # (TQ, E) bf16 VMEM scratch (attention context)
    *, num_heads, q_tile,
):
    f32, bf16 = jnp.float32, jnp.bfloat16
    Tp, E = x_ref.shape[1], x_ref.shape[2]
    TQ = q_tile
    hd = E // num_heads
    n_chunks = Tp // TQ
    neg_big = jnp.float32(-1e30)

    def _hint(v):
        return pl.multiple_of(v, TQ) if TQ % 8 == 0 else v

    qi = pl.program_id(1)
    row0 = _hint(qi * TQ)

    # ---- Prologue (once per batch): LN1 + fused QKV projection over the full
    # sequence, stored as bf16 in VMEM scratch and reused by every query tile.
    @pl.when(qi == 0)
    def _prologue():
        def chunk(c, carry):
            r0 = _hint(c * TQ)
            xc = x_ref[0, pl.ds(r0, TQ), :].astype(f32)                  # (TQ, E)
            xnc = _layernorm(xc, n1s_ref[...], n1b_ref[...]).astype(bf16)
            qkv = jnp.dot(xnc, wqkv_ref[...], preferred_element_type=f32)  # (TQ, 3E)
            q_s[pl.ds(r0, TQ), :] = qkv[:, :E].astype(bf16)              # scaled by 1/sqrt(hd)
            k_s[pl.ds(r0, TQ), :] = qkv[:, E:2 * E].astype(bf16)
            v_s[pl.ds(r0, TQ), :] = qkv[:, 2 * E:].astype(bf16)
            return carry
        lax.fori_loop(0, n_chunks, chunk, 0)

    # ---- Flash-style causal attention for this query tile (keys 0 .. row0+TQ) ----
    q_tile_v = q_s[pl.ds(row0, TQ), :]                                   # (TQ, E) bf16
    # Lower-triangular mask of the diagonal K tile; off-diagonal tiles (kt < qi)
    # are fully unmasked, so the full causal mask is tril | (kt < qi).
    r_iota = lax.broadcasted_iota(jnp.int32, (TQ, TQ), 0)
    c_iota = lax.broadcasted_iota(jnp.int32, (TQ, TQ), 1)
    tril = c_iota <= r_iota

    # TODO(synk): per-head lane slices are not 128-aligned when hd % 128 != 0;
    # a head-batched dot_general layout would avoid the per-head relayout.
    for h in range(num_heads):
        sl = slice(h * hd, (h + 1) * hd)
        qh = q_tile_v[:, sl]                                             # (TQ, hd) bf16

        def kv_step(kt, carry, qh=qh, sl=sl):
            m, l, acc = carry
            k0 = _hint(kt * TQ)
            kh = k_s[pl.ds(k0, TQ), sl]                                  # (TQ, hd) bf16
            vh = v_s[pl.ds(k0, TQ), sl]
            # "NT" matmul: contract the head dim of both operands (no materialized .T)
            s = lax.dot_general(qh, kh, (((1,), (1,)), ((), ())),
                                preferred_element_type=f32)              # (TQ, TQ)
            s = jnp.where(jnp.logical_or(tril, kt < qi), s, neg_big)
            m_new = jnp.maximum(m, jnp.max(s, axis=-1, keepdims=True))
            alpha = jnp.exp(m - m_new)
            p = jnp.exp(s - m_new)
            l_new = alpha * l + jnp.sum(p, axis=-1, keepdims=True)
            acc_new = alpha * acc + jnp.dot(p.astype(bf16), vh,
                                            preferred_element_type=f32)  # (TQ, hd)
            return m_new, l_new, acc_new

        m0 = jnp.full((TQ, 1), neg_big, f32)
        l0 = jnp.zeros((TQ, 1), f32)
        a0 = jnp.zeros((TQ, hd), f32)
        m, l, acc = lax.fori_loop(0, qi + 1, kv_step, (m0, l0, a0))
        inv_l = pl.reciprocal(l, approx=True)                            # EUP, not VALU
        ctx_s[:, sl] = (acc * inv_l).astype(bf16)

    # ---- single K=E output projection + residual 1 (dropout = identity) ----
    x_q = x_ref[0, pl.ds(row0, TQ), :].astype(f32)                       # raw residual rows
    attn = jnp.dot(ctx_s[...], wo_ref[...], preferred_element_type=f32) + bo_ref[...]
    x1 = attn + x_q

    # ---- FeedForward on the query tile + residual 2 ----
    x1n = _layernorm(x1, n2s_ref[...], n2b_ref[...])
    h1 = jnp.dot(x1n.astype(bf16), w1_ref[...],
                 preferred_element_type=f32) + b1_ref[...]               # (TQ, 4E)
    h1 = _gelu(h1)
    ff = jnp.dot(h1.astype(bf16), w2_ref[...],
                 preferred_element_type=f32) + b2_ref[...]               # (TQ, E)
    o_ref[0] = (ff + x1).astype(o_ref.dtype)


def _vmem_capacity_bytes():
    try:
        info = pltpu.get_tpu_info()
        cap = getattr(info, "vmem_capacity_bytes", None)
        if cap:
            return int(cap)
    except Exception:
        pass
    return 64 * 2 ** 20  # conservative default (v7x per-core VMEM)


def _pick_q_tile(T, vmem_cap):
    if T <= 256:
        return T
    # 128 MiB VMEM chips (v5e/v6e): 256-row tiles; 64 MiB (v7x): 128-row tiles.
    return 256 if vmem_cap >= 96 * 2 ** 20 else 128


def _vmem_limit_bytes(Tp, TQ, E, vmem_cap):
    H4 = 4 * E
    w = 2 * (3 * E * E + E * E + E * H4 + H4 * E)        # resident bf16 matmul weights
    small = 4 * (6 * E + H4)                              # f32 LN params + biases
    io = 4 * (2 * Tp * E + 2 * TQ * E)                    # x block + out tile (double-buffered)
    scratch = 2 * (3 * Tp * E + TQ * E)                   # q/k/v + ctx bf16 scratch
    prologue = 4 * (2 * TQ * E + 3 * TQ * E)              # per-chunk LN + qkv f32 temporaries
    attn = 4 * (3 * TQ * TQ + 2 * TQ * E)                 # score/prob tiles + flash accumulators
    ff = 4 * (2 * TQ * H4 + 4 * TQ * E)                   # h1 (pre/post GELU) + x1/x1n/ff
    est = w + small + io + scratch + max(prologue, attn + ff)
    limit = int(1.5 * est)                                # headroom for compiler temporaries
    limit = max(limit, 32 * 2 ** 20)
    limit = min(limit, vmem_cap - 8 * 2 ** 20)            # stay under physical VMEM per core
    return limit
    # TODO(synk): for E large enough that 24*E^2 bytes of resident weights no
    # longer fit (E ~ 2k on v7x), W1/W2 should be streamed by contraction blocks.


def transformer_block(x, params, num_heads, *, q_tile=None):
    B, T, E = x.shape
    H4 = 4 * E
    hd = E // num_heads
    assert E % num_heads == 0

    vmem_cap = _vmem_capacity_bytes()
    if q_tile is None:
        q_tile = _pick_q_tile(T, vmem_cap)
    TQ = min(q_tile, T)
    nq = pl.cdiv(T, TQ)
    Tp = nq * TQ
    # Pad T up to a multiple of the query tile; padded keys are never attended by
    # real queries (causal mask), padded query rows are sliced off below.
    x_in = x if Tp == T else jnp.pad(x, ((0, 0), (0, Tp - T), (0, 0)))

    # Wrapper-side weight prep: fuse Q|K|V into one (E, 3E) matrix with 1/sqrt(hd)
    # folded into the Q columns; cast all matmul weights to bf16 (f32 accumulation).
    bf16 = jnp.bfloat16
    q_scale = 1.0 / math.sqrt(hd)
    wqkv = jnp.concatenate(
        [params["wq"] * q_scale, params["wk"], params["wv"]], axis=1).astype(bf16)
    wo = params["wo"].astype(bf16)
    w1 = params["w1"].astype(bf16)
    w2 = params["w2"].astype(bf16)

    kernel = functools.partial(transformer_block_kernel,
                               num_heads=num_heads, q_tile=TQ)

    # Grid-constant operands: single un-pipelined copy resident in VMEM.
    resident = pl.BlockSpec(memory_space=pltpu.MemorySpace.VMEM)
    in_specs = [
        pl.BlockSpec((1, Tp, E), lambda b, qi: (b, 0, 0)),   # x (full padded seq per batch)
        resident, resident,                                  # norm1 scale / shift
        resident,                                            # fused W_qkv
        resident, resident,                                  # W_o, b_o
        resident, resident,                                  # norm2 scale / shift
        resident, resident,                                  # W_1, b_1
        resident, resident,                                  # W_2, b_2
    ]

    out = pl.pallas_call(
        kernel,
        out_shape=jax.ShapeDtypeStruct((B, Tp, E), x.dtype),
        grid_spec=pltpu.PrefetchScalarGridSpec(
            num_scalar_prefetch=0,
            grid=(B, nq),
            in_specs=in_specs,
            out_specs=pl.BlockSpec((1, TQ, E), lambda b, qi: (b, qi, 0)),
            scratch_shapes=[
                pltpu.VMEM((Tp, E), bf16),   # q
                pltpu.VMEM((Tp, E), bf16),   # k
                pltpu.VMEM((Tp, E), bf16),   # v
                pltpu.VMEM((TQ, E), bf16),   # ctx
            ],
        ),
        compiler_params=pltpu.CompilerParams(
            # qi axis is "arbitrary": K/V scratch computed at qi==0 is reused by
            # later query tiles; only the batch axis is megacore-parallel.
            dimension_semantics=("parallel", "arbitrary"),
            vmem_limit_bytes=_vmem_limit_bytes(Tp, TQ, E, vmem_cap),
        ),
    )(x_in,
      params["n1_scale"], params["n1_shift"],
      wqkv, wo, params["bo"],
      params["n2_scale"], params["n2_shift"],
      w1, params["b1"], w2, params["b2"])

    return out if Tp == T else out[:, :T, :]


def init_params(key, emb_dim):
    E, H4 = emb_dim, 4 * emb_dim
    ks = jax.random.split(key, 8)
    s = 0.02
    return {
        "n1_scale": jnp.ones((1, E), jnp.float32),
        "n1_shift": jnp.zeros((1, E), jnp.float32),
        "wq": s * jax.random.normal(ks[0], (E, E), jnp.float32),
        "wk": s * jax.random.normal(ks[1], (E, E), jnp.float32),
        "wv": s * jax.random.normal(ks[2], (E, E), jnp.float32),
        "wo": s * jax.random.normal(ks[3], (E, E), jnp.float32),
        "bo": s * jax.random.normal(ks[4], (1, E), jnp.float32),
        "n2_scale": jnp.ones((1, E), jnp.float32),
        "n2_shift": jnp.zeros((1, E), jnp.float32),
        "w1": s * jax.random.normal(ks[5], (E, H4), jnp.float32),
        "b1": jnp.zeros((1, H4), jnp.float32),
        "w2": s * jax.random.normal(ks[6], (H4, E), jnp.float32),
        "b2": jnp.zeros((1, E), jnp.float32),
    }


def _reference(x, p, num_heads):
    # plain-JAX f32 reference mirroring the PyTorch forward (eval mode)
    def ln(v, sc, sh, eps=1e-5):
        m = v.mean(-1, keepdims=True)
        var = ((v - m) ** 2).mean(-1, keepdims=True)
        return (v - m) / jnp.sqrt(var + eps) * sc + sh

    B, T, E = x.shape
    hd = E // num_heads
    xn = ln(x, p["n1_scale"], p["n1_shift"])
    q = xn @ p["wq"]; k = xn @ p["wk"]; v = xn @ p["wv"]
    q = q.reshape(B, T, num_heads, hd).transpose(0, 2, 1, 3)
    k = k.reshape(B, T, num_heads, hd).transpose(0, 2, 1, 3)
    v = v.reshape(B, T, num_heads, hd).transpose(0, 2, 1, 3)
    s = jnp.einsum("bhqd,bhkd->bhqk", q, k) / math.sqrt(hd)
    mask = jnp.tril(jnp.ones((T, T), bool))
    s = jnp.where(mask, s, -jnp.inf)
    w = jax.nn.softmax(s, axis=-1)
    ctx = jnp.einsum("bhqk,bhkd->bhqd", w, v).transpose(0, 2, 1, 3).reshape(B, T, E)
    x1 = ctx @ p["wo"] + p["bo"] + x
    x1n = ln(x1, p["n2_scale"], p["n2_shift"])
    c = math.sqrt(2.0 / math.pi)
    h = x1n @ p["w1"] + p["b1"]
    h = 0.5 * h * (1.0 + jnp.tanh(c * (h + 0.044715 * h ** 3)))
    return h @ p["w2"] + p["b2"] + x1


if __name__ == "__main__":
    cfg = {"emb_dim": 32, "context_length": 8, "n_heads": 4,
           "drop_rate": 0.0, "qkv_bias": False}
    key = jax.random.PRNGKey(0)
    kx, kp = jax.random.split(key)
    x = jax.random.normal(kx, (2, cfg["context_length"], cfg["emb_dim"]),
                          jnp.float32)
    params = init_params(kp, cfg["emb_dim"])

    out = jax.block_until_ready(transformer_block(x, params, cfg["n_heads"]))
    ref = _reference(x, params, cfg["n_heads"])

    assert out.shape == x.shape
    # bf16 MXU inputs with f32 accumulation and approx reciprocal -> compare
    # against the pure-f32 reference with a correspondingly looser tolerance.
    assert jnp.allclose(out, ref, atol=2e-2, rtol=2e-2), \
        float(jnp.max(jnp.abs(out - ref)))
    print("KERNEL_OK")
</pallas_src>

<mosaic_0001>
module attributes {stable_mosaic.version = 11 : i64} {
  func.func @transformer_block_kernel(%arg0: i32, %arg1: i32, %arg2: memref<1x8x32xf32, #tpu.memory_space<vmem>>, %arg3: memref<1x32xf32, #tpu.memory_space<vmem>>, %arg4: memref<1x32xf32, #tpu.memory_space<vmem>>, %arg5: memref<32x96xbf16, #tpu.memory_space<vmem>>, %arg6: memref<32x32xbf16, #tpu.memory_space<vmem>>, %arg7: memref<1x32xf32, #tpu.memory_space<vmem>>, %arg8: memref<1x32xf32, #tpu.memory_space<vmem>>, %arg9: memref<1x32xf32, #tpu.memory_space<vmem>>, %arg10: memref<32x128xbf16, #tpu.memory_space<vmem>>, %arg11: memref<1x128xf32, #tpu.memory_space<vmem>>, %arg12: memref<128x32xbf16, #tpu.memory_space<vmem>>, %arg13: memref<1x32xf32, #tpu.memory_space<vmem>>, %arg14: memref<1x8x32xf32, #tpu.memory_space<vmem>>, %arg15: memref<8x32xbf16, #tpu.memory_space<vmem>>, %arg16: memref<8x32xbf16, #tpu.memory_space<vmem>>, %arg17: memref<8x32xbf16, #tpu.memory_space<vmem>>, %arg18: memref<8x32xbf16, #tpu.memory_space<vmem>>) attributes {dimension_semantics = [#tpu.dimension_semantics<parallel>, #tpu.dimension_semantics<arbitrary>], iteration_bounds = array<i64: 2, 1>, scalar_prefetch = 0 : i64, scratch_operands = 4 : i64, tpu.core_type = #tpu.core_type<tc>, window_params = [{transform_indices = @transform_0, window_bounds = array<i64: 1, 8, 32>}, {pipeline_mode = #tpu.pipeline_mode<synchronous>, transform_indices = @transform_1, window_bounds = array<i64: 1, 32>}, {pipeline_mode = #tpu.pipeline_mode<synchronous>, transform_indices = @transform_2, window_bounds = array<i64: 1, 32>}, {pipeline_mode = #tpu.pipeline_mode<synchronous>, transform_indices = @transform_3, window_bounds = array<i64: 32, 96>}, {pipeline_mode = #tpu.pipeline_mode<synchronous>, transform_indices = @transform_4, window_bounds = array<i64: 32, 32>}, {pipeline_mode = #tpu.pipeline_mode<synchronous>, transform_indices = @transform_5, window_bounds = array<i64: 1, 32>}, {pipeline_mode = #tpu.pipeline_mode<synchronous>, transform_indices = @transform_6, window_bounds = array<i64: 1, 32>}, {pipeline_mode = #tpu.pipeline_mode<synchronous>, transform_indices = @transform_7, window_bounds = array<i64: 1, 32>}, {pipeline_mode = #tpu.pipeline_mode<synchronous>, transform_indices = @transform_8, window_bounds = array<i64: 32, 128>}, {pipeline_mode = #tpu.pipeline_mode<synchronous>, transform_indices = @transform_9, window_bounds = array<i64: 1, 128>}, {pipeline_mode = #tpu.pipeline_mode<synchronous>, transform_indices = @transform_10, window_bounds = array<i64: 128, 32>}, {pipeline_mode = #tpu.pipeline_mode<synchronous>, transform_indices = @transform_11, window_bounds = array<i64: 1, 32>}, {transform_indices = @transform_12, window_bounds = array<i64: 1, 8, 32>}]} {
    %c8_i32 = arith.constant 8 : i32
    %0 = arith.muli %arg1, %c8_i32 : i32
    %1 = tpu.assume_multiple %0, 8 : i32
    %c0_i32 = arith.constant 0 : i32
    %2 = arith.cmpi eq, %arg1, %c0_i32 : i32
    %3 = arith.extui %2 : i1 to i32
    %c0_i32_0 = arith.constant 0 : i32
    %4 = arith.cmpi ne, %3, %c0_i32_0 : i32
    scf.if %4 {
      %c0_i32_67 = arith.constant 0 : i32
      %c8_i32_68 = arith.constant 8 : i32
      %125 = arith.muli %c0_i32_67, %c8_i32_68 : i32
      %126 = tpu.assume_multiple %125, 8 : i32
      %c0_69 = arith.constant 0 : index
      %127 = arith.index_cast %126 : i32 to index
      %c0_70 = arith.constant 0 : index
      %128 = vector.load %arg2[%c0_69, %127, %c0_70] : memref<1x8x32xf32, #tpu.memory_space<vmem>>, vector<1x8x32xf32>
      %129 = vector.shape_cast %128 : vector<1x8x32xf32> to vector<8x32xf32>
      %c0_71 = arith.constant 0 : index
      %c0_72 = arith.constant 0 : index
      %130 = vector.load %arg3[%c0_71, %c0_72] : memref<1x32xf32, #tpu.memory_space<vmem>>, vector<1x32xf32>
      %c0_73 = arith.constant 0 : index
      %c0_74 = arith.constant 0 : index
      %131 = vector.load %arg4[%c0_73, %c0_74] : memref<1x32xf32, #tpu.memory_space<vmem>>, vector<1x32xf32>
      %cst_75 = arith.constant dense<0.000000e+00> : vector<8xf32>
      %132 = vector.multi_reduction <add>, %129, %cst_75 [1] : vector<8x32xf32> to vector<8xf32>
      %133 = vector.shape_cast %132 : vector<8xf32> to vector<8x1xf32>
      %cst_76 = arith.constant 3.200000e+01 : f32
      %134 = vector.broadcast %cst_76 : f32 to vector<8x1xf32>
      %135 = arith.divf %133, %134 : vector<8x1xf32>
      %136 = vector.broadcast %135 : vector<8x1xf32> to vector<8x32xf32>
      %137 = arith.subf %129, %136 : vector<8x32xf32>
      %138 = arith.mulf %137, %137 : vector<8x32xf32>
      %cst_77 = arith.constant dense<0.000000e+00> : vector<8xf32>
      %139 = vector.multi_reduction <add>, %138, %cst_77 [1] : vector<8x32xf32> to vector<8xf32>
      %140 = vector.shape_cast %139 : vector<8xf32> to vector<8x1xf32>
      %cst_78 = arith.constant 3.200000e+01 : f32
      %141 = vector.broadcast %cst_78 : f32 to vector<8x1xf32>
      %142 = arith.divf %140, %141 : vector<8x1xf32>
      %143 = vector.broadcast %135 : vector<8x1xf32> to vector<8x32xf32>
      %144 = arith.subf %129, %143 : vector<8x32xf32>
      %cst_79 = arith.constant 9.99999974E-6 : f32
      %145 = vector.broadcast %cst_79 : f32 to vector<8x1xf32>
      %146 = arith.addf %142, %145 : vector<8x1xf32>
      %147 = math.rsqrt %146 : vector<8x1xf32>
      %148 = vector.broadcast %147 : vector<8x1xf32> to vector<8x32xf32>
      %149 = arith.mulf %144, %148 : vector<8x32xf32>
      %150 = vector.broadcast %130 : vector<1x32xf32> to vector<8x32xf32>
      %151 = arith.mulf %149, %150 : vector<8x32xf32>
      %152 = vector.broadcast %131 : vector<1x32xf32> to vector<8x32xf32>
      %153 = arith.addf %151, %152 : vector<8x32xf32>
      %154 = arith.truncf %153 : vector<8x32xf32> to vector<8x32xbf16>
      %c0_80 = arith.constant 0 : index
      %c0_81 = arith.constant 0 : index
      %155 = vector.load %arg5[%c0_80, %c0_81] : memref<32x96xbf16, #tpu.memory_space<vmem>>, vector<32x96xbf16>
      %cst_82 = arith.constant dense<0.000000e+00> : vector<8x96xf32>
      %156 = tpu.matmul %154, %155, %cst_82 {dimension_numbers = #tpu.dot_dimension_numbers<[1], [0], [0], [1], [0, 0, 1, 1], [], []>} : vector<8x32xbf16>, vector<32x96xbf16>, vector<8x96xf32> -> vector<8x96xf32>
      %157 = vector.extract_strided_slice %156 {offsets = [0, 0], sizes = [8, 32], strides = [1, 1]} : vector<8x96xf32> to vector<8x32xf32>
      %158 = arith.truncf %157 : vector<8x32xf32> to vector<8x32xbf16>
      %159 = arith.index_cast %126 : i32 to index
      %c0_83 = arith.constant 0 : index
      %160 = vector.load %arg15[%159, %c0_83] : memref<8x32xbf16, #tpu.memory_space<vmem>>, vector<8x32xbf16>
      tpu.vector_store %arg15[%159, %c0_83], %158 {strides = array<i32>} : memref<8x32xbf16, #tpu.memory_space<vmem>>, vector<8x32xbf16>,
      %161 = vector.extract_strided_slice %156 {offsets = [0, 32], sizes = [8, 32], strides = [1, 1]} : vector<8x96xf32> to vector<8x32xf32>
      %162 = arith.truncf %161 : vector<8x32xf32> to vector<8x32xbf16>
      %163 = arith.index_cast %126 : i32 to index
      %c0_84 = arith.constant 0 : index
      %164 = vector.load %arg16[%163, %c0_84] : memref<8x32xbf16, #tpu.memory_space<vmem>>, vector<8x32xbf16>
      tpu.vector_store %arg16[%163, %c0_84], %162 {strides = array<i32>} : memref<8x32xbf16, #tpu.memory_space<vmem>>, vector<8x32xbf16>,
      %165 = vector.extract_strided_slice %156 {offsets = [0, 64], sizes = [8, 32], strides = [1, 1]} : vector<8x96xf32> to vector<8x32xf32>
      %166 = arith.truncf %165 : vector<8x32xf32> to vector<8x32xbf16>
      %167 = arith.index_cast %126 : i32 to index
      %c0_85 = arith.constant 0 : index
      %168 = vector.load %arg17[%167, %c0_85] : memref<8x32xbf16, #tpu.memory_space<vmem>>, vector<8x32xbf16>
      tpu.vector_store %arg17[%167, %c0_85], %166 {strides = array<i32>} : memref<8x32xbf16, #tpu.memory_space<vmem>>, vector<8x32xbf16>,
      %c1_i32_86 = arith.constant 1 : i32
    } else {
    }
    %5 = arith.index_cast %1 : i32 to index
    %c0 = arith.constant 0 : index
    %6 = vector.load %arg15[%5, %c0] : memref<8x32xbf16, #tpu.memory_space<vmem>>, vector<8x32xbf16>
    %7 = tpu.iota {dimensions = array<i32: 0>} : vector<8x8xi32>
    %8 = tpu.iota {dimensions = array<i32: 1>} : vector<8x8xi32>
    %9 = arith.cmpi sle, %8, %7 : vector<8x8xi32>
    %10 = vector.extract_strided_slice %6 {offsets = [0, 0], sizes = [8, 8], strides = [1, 1]} : vector<8x32xbf16> to vector<8x8xbf16>
    %cst = arith.constant -1.000000e+30 : f32
    %11 = vector.broadcast %cst : f32 to vector<8x1xf32>
    %cst_1 = arith.constant 0.000000e+00 : f32
    %12 = vector.broadcast %cst_1 : f32 to vector<8x1xf32>
    %cst_2 = arith.constant 0.000000e+00 : f32
    %13 = vector.broadcast %cst_2 : f32 to vector<8x8xf32>
    %c1_i32 = arith.constant 1 : i32
    %14 = arith.addi %arg1, %c1_i32 : i32
    %cst_3 = arith.constant -1.000000e+30 : f32
    %c0_i32_4 = arith.constant 0 : i32
    %15 = arith.subi %14, %c0_i32_4 : i32
    %16 = arith.addi %c0_i32_4, %15 : i32
    %c1_i32_5 = arith.constant 1 : i32
    %17:3 = scf.for %arg19 = %c0_i32_4 to %16 step %c1_i32_5 iter_args(%arg20 = %11, %arg21 = %12, %arg22 = %13) -> (vector<8x1xf32>, vector<8x1xf32>, vector<8x8xf32>)  : i32 {
      %c8_i32_67 = arith.constant 8 : i32
      %125 = arith.muli %arg19, %c8_i32_67 : i32
      %126 = tpu.assume_multiple %125, 8 : i32
      %127 = arith.index_cast %126 : i32 to index
      %c0_68 = arith.constant 0 : index
      %128 = vector.load %arg16[%127, %c0_68] : memref<8x32xbf16, #tpu.memory_space<vmem>>, vector<8x8xbf16>
      %129 = arith.index_cast %126 : i32 to index
      %c0_69 = arith.constant 0 : index
      %130 = vector.load %arg17[%129, %c0_69] : memref<8x32xbf16, #tpu.memory_space<vmem>>, vector<8x8xbf16>
      %cst_70 = arith.constant dense<0.000000e+00> : vector<8x8xf32>
      %131 = tpu.matmul %10, %128, %cst_70 {dimension_numbers = #tpu.dot_dimension_numbers<[1], [1], [0], [0], [0, 0, 1, 0], [], []>} : vector<8x8xbf16>, vector<8x8xbf16>, vector<8x8xf32> -> vector<8x8xf32>
      %132 = arith.cmpi slt, %arg19, %arg1 : i32
      %133 = vector.broadcast %132 : i1 to vector<8x8xi1>
      %134 = arith.ori %9, %133 : vector<8x8xi1>
      %135 = vector.broadcast %cst_3 : f32 to vector<8x8xf32>
      %136 = arith.select %134, %131, %135 : vector<8x8xi1>, vector<8x8xf32>
      %cst_71 = arith.constant dense<0xFF800000> : vector<8xf32>
      %137 = vector.multi_reduction <maximumf>, %136, %cst_71 [1] : vector<8x8xf32> to vector<8xf32>
      %138 = vector.shape_cast %137 : vector<8xf32> to vector<8x1xf32>
      %139 = arith.maximumf %arg20, %138 : vector<8x1xf32>
      %140 = arith.subf %arg20, %139 : vector<8x1xf32>
      %141 = math.exp %140 : vector<8x1xf32>
      %142 = vector.broadcast %139 : vector<8x1xf32> to vector<8x8xf32>
      %143 = arith.subf %136, %142 : vector<8x8xf32>
      %144 = math.exp %143 : vector<8x8xf32>
      %145 = arith.mulf %141, %arg21 : vector<8x1xf32>
      %cst_72 = arith.constant dense<0.000000e+00> : vector<8xf32>
      %146 = vector.multi_reduction <add>, %144, %cst_72 [1] : vector<8x8xf32> to vector<8xf32>
      %147 = vector.shape_cast %146 : vector<8xf32> to vector<8x1xf32>
      %148 = arith.addf %145, %147 : vector<8x1xf32>
      %149 = vector.broadcast %141 : vector<8x1xf32> to vector<8x8xf32>
      %150 = arith.mulf %149, %arg22 : vector<8x8xf32>
      %151 = arith.truncf %144 : vector<8x8xf32> to vector<8x8xbf16>
      %cst_73 = arith.constant dense<0.000000e+00> : vector<8x8xf32>
      %152 = tpu.matmul %151, %130, %cst_73 {dimension_numbers = #tpu.dot_dimension_numbers<[1], [0], [0], [1], [0, 0, 1, 1], [], []>} : vector<8x8xbf16>, vector<8x8xbf16>, vector<8x8xf32> -> vector<8x8xf32>
      %153 = arith.addf %150, %152 : vector<8x8xf32>
      scf.yield %139, %148, %153 : vector<8x1xf32>, vector<8x1xf32>, vector<8x8xf32>
    }
    %18 = tpu.reciprocal %17#1 {approx = true} : vector<8x1xf32> -> vector<8x1xf32>
    %19 = vector.broadcast %18 : vector<8x1xf32> to vector<8x8xf32>
    %20 = arith.mulf %17#2, %19 : vector<8x8xf32>
    %21 = arith.truncf %20 : vector<8x8xf32> to vector<8x8xbf16>
    %c0_6 = arith.constant 0 : index
    %c0_7 = arith.constant 0 : index
    %22 = vector.load %arg18[%c0_6, %c0_7] : memref<8x32xbf16, #tpu.memory_space<vmem>>, vector<8x8xbf16>
    tpu.vector_store %arg18[%c0_6, %c0_7], %21 {strides = array<i32>} : memref<8x32xbf16, #tpu.memory_space<vmem>>, vector<8x8xbf16>,
    %23 = vector.extract_strided_slice %6 {offsets = [0, 8], sizes = [8, 8], strides = [1, 1]} : vector<8x32xbf16> to vector<8x8xbf16>
    %cst_8 = arith.constant -1.000000e+30 : f32
    %24 = vector.broadcast %cst_8 : f32 to vector<8x1xf32>
    %cst_9 = arith.constant 0.000000e+00 : f32
    %25 = vector.broadcast %cst_9 : f32 to vector<8x1xf32>
    %cst_10 = arith.constant 0.000000e+00 : f32
    %26 = vector.broadcast %cst_10 : f32 to vector<8x8xf32>
    %c1_i32_11 = arith.constant 1 : i32
    %27 = arith.addi %arg1, %c1_i32_11 : i32
    %cst_12 = arith.constant -1.000000e+30 : f32
    %c0_i32_13 = arith.constant 0 : i32
    %28 = arith.subi %27, %c0_i32_13 : i32
    %29 = arith.addi %c0_i32_13, %28 : i32
    %c1_i32_14 = arith.constant 1 : i32
    %30:3 = scf.for %arg19 = %c0_i32_13 to %29 step %c1_i32_14 iter_args(%arg20 = %24, %arg21 = %25, %arg22 = %26) -> (vector<8x1xf32>, vector<8x1xf32>, vector<8x8xf32>)  : i32 {
      %c8_i32_67 = arith.constant 8 : i32
      %125 = arith.muli %arg19, %c8_i32_67 : i32
      %126 = tpu.assume_multiple %125, 8 : i32
      %127 = arith.index_cast %126 : i32 to index
      %c8_68 = arith.constant 8 : index
      %128 = vector.load %arg16[%127, %c8_68] : memref<8x32xbf16, #tpu.memory_space<vmem>>, vector<8x8xbf16>
      %129 = arith.index_cast %126 : i32 to index
      %c8_69 = arith.constant 8 : index
      %130 = vector.load %arg17[%129, %c8_69] : memref<8x32xbf16, #tpu.memory_space<vmem>>, vector<8x8xbf16>
      %cst_70 = arith.constant dense<0.000000e+00> : vector<8x8xf32>
      %131 = tpu.matmul %23, %128, %cst_70 {dimension_numbers = #tpu.dot_dimension_numbers<[1], [1], [0], [0], [0, 0, 1, 0], [], []>} : vector<8x8xbf16>, vector<8x8xbf16>, vector<8x8xf32> -> vector<8x8xf32>
      %132 = arith.cmpi slt, %arg19, %arg1 : i32
      %133 = vector.broadcast %132 : i1 to vector<8x8xi1>
      %134 = arith.ori %9, %133 : vector<8x8xi1>
      %135 = vector.broadcast %cst_12 : f32 to vector<8x8xf32>
      %136 = arith.select %134, %131, %135 : vector<8x8xi1>, vector<8x8xf32>
      %cst_71 = arith.constant dense<0xFF800000> : vector<8xf32>
      %137 = vector.multi_reduction <maximumf>, %136, %cst_71 [1] : vector<8x8xf32> to vector<8xf32>
      %138 = vector.shape_cast %137 : vector<8xf32> to vector<8x1xf32>
      %139 = arith.maximumf %arg20, %138 : vector<8x1xf32>
      %140 = arith.subf %arg20, %139 : vector<8x1xf32>
      %141 = math.exp %140 : vector<8x1xf32>
      %142 = vector.broadcast %139 : vector<8x1xf32> to vector<8x8xf32>
      %143 = arith.subf %136, %142 : vector<8x8xf32>
      %144 = math.exp %143 : vector<8x8xf32>
      %145 = arith.mulf %141, %arg21 : vector<8x1xf32>
      %cst_72 = arith.constant dense<0.000000e+00> : vector<8xf32>
      %146 = vector.multi_reduction <add>, %144, %cst_72 [1] : vector<8x8xf32> to vector<8xf32>
      %147 = vector.shape_cast %146 : vector<8xf32> to vector<8x1xf32>
      %148 = arith.addf %145, %147 : vector<8x1xf32>
      %149 = vector.broadcast %141 : vector<8x1xf32> to vector<8x8xf32>
      %150 = arith.mulf %149, %arg22 : vector<8x8xf32>
      %151 = arith.truncf %144 : vector<8x8xf32> to vector<8x8xbf16>
      %cst_73 = arith.constant dense<0.000000e+00> : vector<8x8xf32>
      %152 = tpu.matmul %151, %130, %cst_73 {dimension_numbers = #tpu.dot_dimension_numbers<[1], [0], [0], [1], [0, 0, 1, 1], [], []>} : vector<8x8xbf16>, vector<8x8xbf16>, vector<8x8xf32> -> vector<8x8xf32>
      %153 = arith.addf %150, %152 : vector<8x8xf32>
      scf.yield %139, %148, %153 : vector<8x1xf32>, vector<8x1xf32>, vector<8x8xf32>
    }
    %31 = tpu.reciprocal %30#1 {approx = true} : vector<8x1xf32> -> vector<8x1xf32>
    %32 = vector.broadcast %31 : vector<8x1xf32> to vector<8x8xf32>
    %33 = arith.mulf %30#2, %32 : vector<8x8xf32>
    %34 = arith.truncf %33 : vector<8x8xf32> to vector<8x8xbf16>
    %c0_15 = arith.constant 0 : index
    %c8 = arith.constant 8 : index
    %35 = vector.load %arg18[%c0_15, %c8] : memref<8x32xbf16, #tpu.memory_space<vmem>>, vector<8x8xbf16>
    tpu.vector_store %arg18[%c0_15, %c8], %34 {strides = array<i32>} : memref<8x32xbf16, #tpu.memory_space<vmem>>, vector<8x8xbf16>,
    %36 = vector.extract_strided_slice %6 {offsets = [0, 16], sizes = [8, 8], strides = [1, 1]} : vector<8x32xbf16> to vector<8x8xbf16>
    %cst_16 = arith.constant -1.000000e+30 : f32
    %37 = vector.broadcast %cst_16 : f32 to vector<8x1xf32>
    %cst_17 = arith.constant 0.000000e+00 : f32
    %38 = vector.broadcast %cst_17 : f32 to vector<8x1xf32>
    %cst_18 = arith.constant 0.000000e+00 : f32
    %39 = vector.broadcast %cst_18 : f32 to vector<8x8xf32>
    %c1_i32_19 = arith.constant 1 : i32
    %40 = arith.addi %arg1, %c1_i32_19 : i32
    %cst_20 = arith.constant -1.000000e+30 : f32
    %c0_i32_21 = arith.constant 0 : i32
    %41 = arith.subi %40, %c0_i32_21 : i32
    %42 = arith.addi %c0_i32_21, %41 : i32
    %c1_i32_22 = arith.constant 1 : i32
    %43:3 = scf.for %arg19 = %c0_i32_21 to %42 step %c1_i32_22 iter_args(%arg20 = %37, %arg21 = %38, %arg22 = %39) -> (vector<8x1xf32>, vector<8x1xf32>, vector<8x8xf32>)  : i32 {
      %c8_i32_67 = arith.constant 8 : i32
      %125 = arith.muli %arg19, %c8_i32_67 : i32
      %126 = tpu.assume_multiple %125, 8 : i32
      %127 = arith.index_cast %126 : i32 to index
      %c16_68 = arith.constant 16 : index
      %128 = vector.load %arg16[%127, %c16_68] : memref<8x32xbf16, #tpu.memory_space<vmem>>, vector<8x8xbf16>
      %129 = arith.index_cast %126 : i32 to index
      %c16_69 = arith.constant 16 : index
      %130 = vector.load %arg17[%129, %c16_69] : memref<8x32xbf16, #tpu.memory_space<vmem>>, vector<8x8xbf16>
      %cst_70 = arith.constant dense<0.000000e+00> : vector<8x8xf32>
      %131 = tpu.matmul %36, %128, %cst_70 {dimension_numbers = #tpu.dot_dimension_numbers<[1], [1], [0], [0], [0, 0, 1, 0], [], []>} : vector<8x8xbf16>, vector<8x8xbf16>, vector<8x8xf32> -> vector<8x8xf32>
      %132 = arith.cmpi slt, %arg19, %arg1 : i32
      %133 = vector.broadcast %132 : i1 to vector<8x8xi1>
      %134 = arith.ori %9, %133 : vector<8x8xi1>
      %135 = vector.broadcast %cst_20 : f32 to vector<8x8xf32>
      %136 = arith.select %134, %131, %135 : vector<8x8xi1>, vector<8x8xf32>
      %cst_71 = arith.constant dense<0xFF800000> : vector<8xf32>
      %137 = vector.multi_reduction <maximumf>, %136, %cst_71 [1] : vector<8x8xf32> to vector<8xf32>
      %138 = vector.shape_cast %137 : vector<8xf32> to vector<8x1xf32>
      %139 = arith.maximumf %arg20, %138 : vector<8x1xf32>
      %140 = arith.subf %arg20, %139 : vector<8x1xf32>
      %141 = math.exp %140 : vector<8x1xf32>
      %142 = vector.broadcast %139 : vector<8x1xf32> to vector<8x8xf32>
      %143 = arith.subf %136, %142 : vector<8x8xf32>
      %144 = math.exp %143 : vector<8x8xf32>
      %145 = arith.mulf %141, %arg21 : vector<8x1xf32>
      %cst_72 = arith.constant dense<0.000000e+00> : vector<8xf32>
      %146 = vector.multi_reduction <add>, %144, %cst_72 [1] : vector<8x8xf32> to vector<8xf32>
      %147 = vector.shape_cast %146 : vector<8xf32> to vector<8x1xf32>
      %148 = arith.addf %145, %147 : vector<8x1xf32>
      %149 = vector.broadcast %141 : vector<8x1xf32> to vector<8x8xf32>
      %150 = arith.mulf %149, %arg22 : vector<8x8xf32>
      %151 = arith.truncf %144 : vector<8x8xf32> to vector<8x8xbf16>
      %cst_73 = arith.constant dense<0.000000e+00> : vector<8x8xf32>
      %152 = tpu.matmul %151, %130, %cst_73 {dimension_numbers = #tpu.dot_dimension_numbers<[1], [0], [0], [1], [0, 0, 1, 1], [], []>} : vector<8x8xbf16>, vector<8x8xbf16>, vector<8x8xf32> -> vector<8x8xf32>
      %153 = arith.addf %150, %152 : vector<8x8xf32>
      scf.yield %139, %148, %153 : vector<8x1xf32>, vector<8x1xf32>, vector<8x8xf32>
    }
    %44 = tpu.reciprocal %43#1 {approx = true} : vector<8x1xf32> -> vector<8x1xf32>
    %45 = vector.broadcast %44 : vector<8x1xf32> to vector<8x8xf32>
    %46 = arith.mulf %43#2, %45 : vector<8x8xf32>
    %47 = arith.truncf %46 : vector<8x8xf32> to vector<8x8xbf16>
    %c0_23 = arith.constant 0 : index
    %c16 = arith.constant 16 : index
    %48 = vector.load %arg18[%c0_23, %c16] : memref<8x32xbf16, #tpu.memory_space<vmem>>, vector<8x8xbf16>
    tpu.vector_store %arg18[%c0_23, %c16], %47 {strides = array<i32>} : memref<8x32xbf16, #tpu.memory_space<vmem>>, vector<8x8xbf16>,
    %49 = vector.extract_strided_slice %6 {offsets = [0, 24], sizes = [8, 8], strides = [1, 1]} : vector<8x32xbf16> to vector<8x8xbf16>
    %cst_24 = arith.constant -1.000000e+30 : f32
    %50 = vector.broadcast %cst_24 : f32 to vector<8x1xf32>
    %cst_25 = arith.constant 0.000000e+00 : f32
    %51 = vector.broadcast %cst_25 : f32 to vector<8x1xf32>
    %cst_26 = arith.constant 0.000000e+00 : f32
    %52 = vector.broadcast %cst_26 : f32 to vector<8x8xf32>
    %c1_i32_27 = arith.constant 1 : i32
    %53 = arith.addi %arg1, %c1_i32_27 : i32
    %cst_28 = arith.constant -1.000000e+30 : f32
    %c0_i32_29 = arith.constant 0 : i32
    %54 = arith.subi %53, %c0_i32_29 : i32
    %55 = arith.addi %c0_i32_29, %54 : i32
    %c1_i32_30 = arith.constant 1 : i32
    %56:3 = scf.for %arg19 = %c0_i32_29 to %55 step %c1_i32_30 iter_args(%arg20 = %50, %arg21 = %51, %arg22 = %52) -> (vector<8x1xf32>, vector<8x1xf32>, vector<8x8xf32>)  : i32 {
      %c8_i32_67 = arith.constant 8 : i32
      %125 = arith.muli %arg19, %c8_i32_67 : i32
      %126 = tpu.assume_multiple %125, 8 : i32
      %127 = arith.index_cast %126 : i32 to index
      %c24_68 = arith.constant 24 : index
      %128 = vector.load %arg16[%127, %c24_68] : memref<8x32xbf16, #tpu.memory_space<vmem>>, vector<8x8xbf16>
      %129 = arith.index_cast %126 : i32 to index
      %c24_69 = arith.constant 24 : index
      %130 = vector.load %arg17[%129, %c24_69] : memref<8x32xbf16, #tpu.memory_space<vmem>>, vector<8x8xbf16>
      %cst_70 = arith.constant dense<0.000000e+00> : vector<8x8xf32>
      %131 = tpu.matmul %49, %128, %cst_70 {dimension_numbers = #tpu.dot_dimension_numbers<[1], [1], [0], [0], [0, 0, 1, 0], [], []>} : vector<8x8xbf16>, vector<8x8xbf16>, vector<8x8xf32> -> vector<8x8xf32>
      %132 = arith.cmpi slt, %arg19, %arg1 : i32
      %133 = vector.broadcast %132 : i1 to vector<8x8xi1>
      %134 = arith.ori %9, %133 : vector<8x8xi1>
      %135 = vector.broadcast %cst_28 : f32 to vector<8x8xf32>
      %136 = arith.select %134, %131, %135 : vector<8x8xi1>, vector<8x8xf32>
      %cst_71 = arith.constant dense<0xFF800000> : vector<8xf32>
      %137 = vector.multi_reduction <maximumf>, %136, %cst_71 [1] : vector<8x8xf32> to vector<8xf32>
      %138 = vector.shape_cast %137 : vector<8xf32> to vector<8x1xf32>
      %139 = arith.maximumf %arg20, %138 : vector<8x1xf32>
      %140 = arith.subf %arg20, %139 : vector<8x1xf32>
      %141 = math.exp %140 : vector<8x1xf32>
      %142 = vector.broadcast %139 : vector<8x1xf32> to vector<8x8xf32>
      %143 = arith.subf %136, %142 : vector<8x8xf32>
      %144 = math.exp %143 : vector<8x8xf32>
      %145 = arith.mulf %141, %arg21 : vector<8x1xf32>
      %cst_72 = arith.constant dense<0.000000e+00> : vector<8xf32>
      %146 = vector.multi_reduction <add>, %144, %cst_72 [1] : vector<8x8xf32> to vector<8xf32>
      %147 = vector.shape_cast %146 : vector<8xf32> to vector<8x1xf32>
      %148 = arith.addf %145, %147 : vector<8x1xf32>
      %149 = vector.broadcast %141 : vector<8x1xf32> to vector<8x8xf32>
      %150 = arith.mulf %149, %arg22 : vector<8x8xf32>
      %151 = arith.truncf %144 : vector<8x8xf32> to vector<8x8xbf16>
      %cst_73 = arith.constant dense<0.000000e+00> : vector<8x8xf32>
      %152 = tpu.matmul %151, %130, %cst_73 {dimension_numbers = #tpu.dot_dimension_numbers<[1], [0], [0], [1], [0, 0, 1, 1], [], []>} : vector<8x8xbf16>, vector<8x8xbf16>, vector<8x8xf32> -> vector<8x8xf32>
      %153 = arith.addf %150, %152 : vector<8x8xf32>
      scf.yield %139, %148, %153 : vector<8x1xf32>, vector<8x1xf32>, vector<8x8xf32>
    }
    %57 = tpu.reciprocal %56#1 {approx = true} : vector<8x1xf32> -> vector<8x1xf32>
    %58 = vector.broadcast %57 : vector<8x1xf32> to vector<8x8xf32>
    %59 = arith.mulf %56#2, %58 : vector<8x8xf32>
    %60 = arith.truncf %59 : vector<8x8xf32> to vector<8x8xbf16>
    %c0_31 = arith.constant 0 : index
    %c24 = arith.constant 24 : index
    %61 = vector.load %arg18[%c0_31, %c24] : memref<8x32xbf16, #tpu.memory_space<vmem>>, vector<8x8xbf16>
    tpu.vector_store %arg18[%c0_31, %c24], %60 {strides = array<i32>} : memref<8x32xbf16, #tpu.memory_space<vmem>>, vector<8x8xbf16>,
    %c0_32 = arith.constant 0 : index
    %62 = arith.index_cast %1 : i32 to index
    %c0_33 = arith.constant 0 : index
    %63 = vector.load %arg2[%c0_32, %62, %c0_33] : memref<1x8x32xf32, #tpu.memory_space<vmem>>, vector<1x8x32xf32>
    %64 = vector.shape_cast %63 : vector<1x8x32xf32> to vector<8x32xf32>
    %c0_34 = arith.constant 0 : index
    %c0_35 = arith.constant 0 : index
    %65 = vector.load %arg18[%c0_34, %c0_35] : memref<8x32xbf16, #tpu.memory_space<vmem>>, vector<8x32xbf16>
    %c0_36 = arith.constant 0 : index
    %c0_37 = arith.constant 0 : index
    %66 = vector.load %arg6[%c0_36, %c0_37] : memref<32x32xbf16, #tpu.memory_space<vmem>>, vector<32x32xbf16>
    %cst_38 = arith.constant dense<0.000000e+00> : vector<8x32xf32>
    %67 = tpu.matmul %65, %66, %cst_38 {dimension_numbers = #tpu.dot_dimension_numbers<[1], [0], [0], [1], [0, 0, 1, 1], [], []>} : vector<8x32xbf16>, vector<32x32xbf16>, vector<8x32xf32> -> vector<8x32xf32>
    %c0_39 = arith.constant 0 : index
    %c0_40 = arith.constant 0 : index
    %68 = vector.load %arg7[%c0_39, %c0_40] : memref<1x32xf32, #tpu.memory_space<vmem>>, vector<1x32xf32>
    %69 = vector.broadcast %68 : vector<1x32xf32> to vector<8x32xf32>
    %70 = arith.addf %67, %69 : vector<8x32xf32>
    %71 = arith.addf %70, %64 : vector<8x32xf32>
    %c0_41 = arith.constant 0 : index
    %c0_42 = arith.constant 0 : index
    %72 = vector.load %arg8[%c0_41, %c0_42] : memref<1x32xf32, #tpu.memory_space<vmem>>, vector<1x32xf32>
    %c0_43 = arith.constant 0 : index
    %c0_44 = arith.constant 0 : index
    %73 = vector.load %arg9[%c0_43, %c0_44] : memref<1x32xf32, #tpu.memory_space<vmem>>, vector<1x32xf32>
    %cst_45 = arith.constant dense<0.000000e+00> : vector<8xf32>
    %74 = vector.multi_reduction <add>, %71, %cst_45 [1] : vector<8x32xf32> to vector<8xf32>
    %75 = vector.shape_cast %74 : vector<8xf32> to vector<8x1xf32>
    %cst_46 = arith.constant 3.200000e+01 : f32
    %76 = vector.broadcast %cst_46 : f32 to vector<8x1xf32>
    %77 = arith.divf %75, %76 : vector<8x1xf32>
    %78 = vector.broadcast %77 : vector<8x1xf32> to vector<8x32xf32>
    %79 = arith.subf %71, %78 : vector<8x32xf32>
    %80 = arith.mulf %79, %79 : vector<8x32xf32>
    %cst_47 = arith.constant dense<0.000000e+00> : vector<8xf32>
    %81 = vector.multi_reduction <add>, %80, %cst_47 [1] : vector<8x32xf32> to vector<8xf32>
    %82 = vector.shape_cast %81 : vector<8xf32> to vector<8x1xf32>
    %cst_48 = arith.constant 3.200000e+01 : f32
    %83 = vector.broadcast %cst_48 : f32 to vector<8x1xf32>
    %84 = arith.divf %82, %83 : vector<8x1xf32>
    %85 = vector.broadcast %77 : vector<8x1xf32> to vector<8x32xf32>
    %86 = arith.subf %71, %85 : vector<8x32xf32>
    %cst_49 = arith.constant 9.99999974E-6 : f32
    %87 = vector.broadcast %cst_49 : f32 to vector<8x1xf32>
    %88 = arith.addf %84, %87 : vector<8x1xf32>
    %89 = math.rsqrt %88 : vector<8x1xf32>
    %90 = vector.broadcast %89 : vector<8x1xf32> to vector<8x32xf32>
    %91 = arith.mulf %86, %90 : vector<8x32xf32>
    %92 = vector.broadcast %72 : vector<1x32xf32> to vector<8x32xf32>
    %93 = arith.mulf %91, %92 : vector<8x32xf32>
    %94 = vector.broadcast %73 : vector<1x32xf32> to vector<8x32xf32>
    %95 = arith.addf %93, %94 : vector<8x32xf32>
    %96 = arith.truncf %95 : vector<8x32xf32> to vector<8x32xbf16>
    %c0_50 = arith.constant 0 : index
    %c0_51 = arith.constant 0 : index
    %97 = vector.load %arg10[%c0_50, %c0_51] : memref<32x128xbf16, #tpu.memory_space<vmem>>, vector<32x128xbf16>
    %cst_52 = arith.constant dense<0.000000e+00> : vector<8x128xf32>
    %98 = tpu.matmul %96, %97, %cst_52 {dimension_numbers = #tpu.dot_dimension_numbers<[1], [0], [0], [1], [0, 0, 1, 1], [], []>} : vector<8x32xbf16>, vector<32x128xbf16>, vector<8x128xf32> -> vector<8x128xf32>
    %c0_53 = arith.constant 0 : index
    %c0_54 = arith.constant 0 : index
    %99 = vector.load %arg11[%c0_53, %c0_54] : memref<1x128xf32, #tpu.memory_space<vmem>>, vector<1x128xf32>
    %100 = vector.broadcast %99 : vector<1x128xf32> to vector<8x128xf32>
    %101 = arith.addf %98, %100 : vector<8x128xf32>
    %cst_55 = arith.constant 5.000000e-01 : f32
    %102 = vector.broadcast %cst_55 : f32 to vector<8x128xf32>
    %103 = arith.mulf %102, %101 : vector<8x128xf32>
    %cst_56 = arith.constant 4.471500e-02 : f32
    %104 = vector.broadcast %cst_56 : f32 to vector<8x128xf32>
    %105 = arith.mulf %104, %101 : vector<8x128xf32>
    %106 = arith.mulf %105, %101 : vector<8x128xf32>
    %107 = arith.mulf %106, %101 : vector<8x128xf32>
    %108 = arith.addf %101, %107 : vector<8x128xf32>
    %cst_57 = arith.constant 0.797884583 : f32
    %109 = vector.broadcast %cst_57 : f32 to vector<8x128xf32>
    %110 = arith.mulf %109, %108 : vector<8x128xf32>
    %111 = math.tanh %110 : vector<8x128xf32>
    %cst_58 = arith.constant 1.000000e+00 : f32
    %112 = vector.broadcast %cst_58 : f32 to vector<8x128xf32>
    %113 = arith.addf %112, %111 : vector<8x128xf32>
    %114 = arith.mulf %103, %113 : vector<8x128xf32>
    %115 = arith.truncf %114 : vector<8x128xf32> to vector<8x128xbf16>
    %c0_59 = arith.constant 0 : index
    %c0_60 = arith.constant 0 : index
    %116 = vector.load %arg12[%c0_59, %c0_60] : memref<128x32xbf16, #tpu.memory_space<vmem>>, vector<128x32xbf16>
    %cst_61 = arith.constant dense<0.000000e+00> : vector<8x32xf32>
    %117 = tpu.matmul %115, %116, %cst_61 {dimension_numbers = #tpu.dot_dimension_numbers<[1], [0], [0], [1], [0, 0, 1, 1], [], []>} : vector<8x128xbf16>, vector<128x32xbf16>, vector<8x32xf32> -> vector<8x32xf32>
    %c0_62 = arith.constant 0 : index
    %c0_63 = arith.constant 0 : index
    %118 = vector.load %arg13[%c0_62, %c0_63] : memref<1x32xf32, #tpu.memory_space<vmem>>, vector<1x32xf32>
    %119 = vector.broadcast %118 : vector<1x32xf32> to vector<8x32xf32>
    %120 = arith.addf %117, %119 : vector<8x32xf32>
    %121 = arith.addf %120, %71 : vector<8x32xf32>
    %c0_64 = arith.constant 0 : index
    %c0_65 = arith.constant 0 : index
    %c0_66 = arith.constant 0 : index
    %122 = vector.load %arg14[%c0_64, %c0_65, %c0_66] : memref<1x8x32xf32, #tpu.memory_space<vmem>>, vector<1x8x32xf32>
    %123 = vector.shape_cast %122 : vector<1x8x32xf32> to vector<8x32xf32>
    %124 = vector.shape_cast %121 : vector<8x32xf32> to vector<1x8x32xf32>
    tpu.vector_store %arg14[%c0_64, %c0_65, %c0_66], %124 {strides = array<i32>} : memref<1x8x32xf32, #tpu.memory_space<vmem>>, vector<1x8x32xf32>,
    return
  }
  func.func @transform_0(%arg0: i32, %arg1: i32) -> (i32, i32, i32) {
    %c0_i32 = arith.constant 0 : i32
    %c0_i32_0 = arith.constant 0 : i32
    %c0_i32_1 = arith.constant 0 : i32
    return %arg0, %c0_i32, %c0_i32_0 : i32, i32, i32
  }
  func.func @transform_1(%arg0: i32, %arg1: i32) -> (i32, i32) {
    %c0_i32 = arith.constant 0 : i32
    %c0_i32_0 = arith.constant 0 : i32
    %c0_i32_1 = arith.constant 0 : i32
    return %c0_i32, %c0_i32_0 : i32, i32
  }
  func.func @transform_2(%arg0: i32, %arg1: i32) -> (i32, i32) {
    %c0_i32 = arith.constant 0 : i32
    %c0_i32_0 = arith.constant 0 : i32
    %c0_i32_1 = arith.constant 0 : i32
    return %c0_i32, %c0_i32_0 : i32, i32
  }
  func.func @transform_3(%arg0: i32, %arg1: i32) -> (i32, i32) {
    %c0_i32 = arith.constant 0 : i32
    %c0_i32_0 = arith.constant 0 : i32
    %c0_i32_1 = arith.constant 0 : i32
    return %c0_i32, %c0_i32_0 : i32, i32
  }
  func.func @transform_4(%arg0: i32, %arg1: i32) -> (i32, i32) {
    %c0_i32 = arith.constant 0 : i32
    %c0_i32_0 = arith.constant 0 : i32
    %c0_i32_1 = arith.constant 0 : i32
    return %c0_i32, %c0_i32_0 : i32, i32
  }
  func.func @transform_5(%arg0: i32, %arg1: i32) -> (i32, i32) {
    %c0_i32 = arith.constant 0 : i32
    %c0_i32_0 = arith.constant 0 : i32
    %c0_i32_1 = arith.constant 0 : i32
    return %c0_i32, %c0_i32_0 : i32, i32
  }
  func.func @transform_6(%arg0: i32, %arg1: i32) -> (i32, i32) {
    %c0_i32 = arith.constant 0 : i32
    %c0_i32_0 = arith.constant 0 : i32
    %c0_i32_1 = arith.constant 0 : i32
    return %c0_i32, %c0_i32_0 : i32, i32
  }
  func.func @transform_7(%arg0: i32, %arg1: i32) -> (i32, i32) {
    %c0_i32 = arith.constant 0 : i32
    %c0_i32_0 = arith.constant 0 : i32
    %c0_i32_1 = arith.constant 0 : i32
    return %c0_i32, %c0_i32_0 : i32, i32
  }
  func.func @transform_8(%arg0: i32, %arg1: i32) -> (i32, i32) {
    %c0_i32 = arith.constant 0 : i32
    %c0_i32_0 = arith.constant 0 : i32
    %c0_i32_1 = arith.constant 0 : i32
    return %c0_i32, %c0_i32_0 : i32, i32
  }
  func.func @transform_9(%arg0: i32, %arg1: i32) -> (i32, i32) {
    %c0_i32 = arith.constant 0 : i32
    %c0_i32_0 = arith.constant 0 : i32
    %c0_i32_1 = arith.constant 0 : i32
    return %c0_i32, %c0_i32_0 : i32, i32
  }
  func.func @transform_10(%arg0: i32, %arg1: i32) -> (i32, i32) {
    %c0_i32 = arith.constant 0 : i32
    %c0_i32_0 = arith.constant 0 : i32
    %c0_i32_1 = arith.constant 0 : i32
    return %c0_i32, %c0_i32_0 : i32, i32
  }
  func.func @transform_11(%arg0: i32, %arg1: i32) -> (i32, i32) {
    %c0_i32 = arith.constant 0 : i32
    %c0_i32_0 = arith.constant 0 : i32
    %c0_i32_1 = arith.constant 0 : i32
    return %c0_i32, %c0_i32_0 : i32, i32
  }
  func.func @transform_12(%arg0: i32, %arg1: i32) -> (i32, i32, i32) {
    %c0_i32 = arith.constant 0 : i32
    %c0_i32_0 = arith.constant 0 : i32
    return %arg0, %arg1, %c0_i32 : i32, i32, i32
  }
}

</mosaic_0001>

<bundles_post_ra>
// kernel: tpu_custom_call.1
= control target key start
LH: loop header
LB: loop body
LE: loop exit
PB: predicated region body
PF: predicated region fallthrough
CT: control target
= control target key end

     0   :  { %s2252_s0 = inlined_call_operand.vmem [shape: f32[2,8,32], index: 0, kind: input, shape index: {}]   ;;  %s2253_s1 = inlined_call_operand.vmem [shape: f32[1,32], index: 1, kind: input, shape index: {}]   ;;  %s2254_s2 = inlined_call_operand.vmem [shape: f32[1,32], index: 2, kind: input, shape index: {}]   ;;  %s2255_s3 = inlined_call_operand.vmem [shape: bf16[32,96], index: 3, kind: input, shape index: {}]   ;;  %s2256_s4 = inlined_call_operand.vmem [shape: bf16[32,32], index: 4, kind: input, shape index: {}]   ;;  %s2257_s5 = inlined_call_operand.vmem [shape: f32[1,32], index: 5, kind: input, shape index: {}]   ;;  %s2258_s6 = inlined_call_operand.vmem [shape: f32[1,32], index: 6, kind: input, shape index: {}]   ;;  %s2259_s7 = inlined_call_operand.vmem [shape: f32[1,32], index: 7, kind: input, shape index: {}]   ;;  %s2260_s8 = inlined_call_operand.vmem [shape: bf16[32,128], index: 8, kind: input, shape index: {}]   ;;  %s2261_s9 = inlined_call_operand.vmem [shape: f32[1,128], index: 9, kind: input, shape index: {}]   ;;  %s2262_s10 = inlined_call_operand.vmem [shape: bf16[128,32], index: 10, kind: input, shape index: {}]   ;;  %s2263_s11 = inlined_call_operand.vmem [shape: f32[1,32], index: 11, kind: input, shape index: {}]   ;;  %s2264_s12 = inlined_call_operand.hbm [shape: f32[2,8,32], index: 12, kind: output, shape index: {}]  }
   0x1   :  { %2266 = sst [smem:[#allocation9_spill]] %s2252_s0 }
   0x2   :  { %2267 = sst [smem:[#allocation10_spill]] %s2253_s1 }
   0x3   :  { %2268 = sst [smem:[#allocation11_spill]] %s2254_s2 }
   0x4   :  { %2269 = sst [smem:[#allocation12_spill]] %s2255_s3 }
   0x5   :  { %17 = vsyncpa [#allocation7], 0 }
   0x6   :  { %19 = vsyncpa [#allocation7 + $0x1], 0  ;;  %s1919_s21 = smov 0   ;;  %s1921_s22 = smov 0  }
   0x7   :  { %s1923_s23 = smov 0   ;;  %s1925_s24 = smov 0  }
   0x8   :  { %s1927_s25 = smov 0   ;;  %s1929_s26 = smov 0  }
   0x9 LB: > { %s1302_s27 = sadd.s32 4294967295, %s1779_s26   ;;  %s1303_s28 = sadd.s32 4294967294, %s1779_s26   ;;  %s1779_s26 = sphi %s1929_s26, %s25_s26   ;;  %s1775_s25 = sphi %s1927_s25, %s2292_s25   ;;  %s1771_s24 = sphi %s1925_s24, %s2291_s24   ;;  %s1767_s23 = sphi %s1923_s23, %s2290_s23   ;;  %s1763_s22 = sphi %s1921_s22, %s2289_s22   ;;  %s1759_s21 = sphi %s1919_s21, %s2288_s21  }
   0xa   : > { %s37_s29 = sadd.s32 1, %s1775_s25  ;;  %s303_s30 = sadd.s32 1, %s1767_s23 }
   0xb   : > { %p39_p0 = scmp.ge.s32.totalorder %s37_s29, 2  ;;  %p313_p1 = scmp.ne.s32.totalorder %s1767_s23, %s1763_s22 }
   0xc   : > { %p314_p2 = scmp.eq.s32.totalorder %s1302_s27, 1  ;;  %p319_p3 = scmp.ne.s32.totalorder %s1763_s22, %s1759_s21 }
   0xd   : > { %s2294_s29 = smov (%p39_p0, %s37_s29), 0  ;;  %p320_p5 = scmp.eq.s32.totalorder %s1303_s28, 1 }
   0xe   : > { %p1959_p4 = por %p314_p2, %p313_p1  ;;  %s298_s14 = ssub.s32 %s1775_s25, %s2294_s29 }
   0xf   : > { %p1306_p6 = scmp.ge.s32.totalorder %s1779_s26, 1  ;;  %p301_p7 = scmp.eq.s32.totalorder %s298_s14, 0 }
  0x10   : > { %p1966_p8 = por %p320_p5, %p319_p3  ;;  %p378_p9 = scmp.lt.s32.totalorder %s1779_s26, 3 }
  0x11   : > { %s1972_s16 = scalar_select %p301_p7, %s1767_s23, %s303_s30  }
  0x12   : > { %p379_p10 = pnand %p1306_p6, %p378_p9 }
  0x13   : > { %p419_p11 = scmp.lt.s32.totalorder (!%p379_p10), %s1771_s24, 1  ;;  %s2272_s0 = sld [smem:[#allocation9_spill]] (!%p379_p10) }
  0x14   : > { %382 = sbr.rel (%p379_p10) target bundleno = 3612 (0xe1c), region = 68  ;;  %s2265_s28 = sand.u32 (!%p379_p10), 1, %s1763_s22  }
  0x15   : > { %s1990_s30 = sshll.u32 (!%p379_p10), %s2265_s28, 3  ;;  %s2273_s3 = sld [smem:[#allocation12_spill]] (!%p379_p10) }
  0x16   : > { %s2274_s1 = sld [smem:[#allocation10_spill]] (!%p379_p10)  ;;  %s1846_s19 = smov (!%p379_p10), 96  }
  0x17   : > { %s2275_s2 = sld [smem:[#allocation11_spill]] (!%p379_p10)  ;;  %s1847_s20 = smov (!%p379_p10), 64  }
  0x19   : > { %s420_s17 = scalar_select %p419_p11, %s1771_s24, 1  ;;  %vm432_vm0 = vcmask 261120   ;;  %v1845_v2 = vmov 32.0   ;;  %vm504_vm5 = vcmask 257024   ;;  %v520_v36 = vlaneseq }
  0x1a   : > { %1600 = vrcp.f32 %v1845_v2  ;;  %v1781_v41 = vmov 0.0   ;;  %v1785_v42 = vmov 0.0   ;;  %v1789_v43 = vmov -1e+30  }
  0x1b   : > { %s1308_s18 = sshll.u32 %s420_s17, 3  ;;  %v1393_v14 = vld [vmem:[%s2273_s3 + $0x8] sm:$0xff]  ;;  %v1392_v15 = vld [vmem:[%s2273_s3] sm:$0xff]  ;;  %v2009_v37 = vshrl.u32 %v520_v36, 7  ;;  %v2011_v38 = vand.u32 127, %v520_v36  ;;  %s2018_s17 = smov 0  }
  0x1c   : > { %s1979_s27 = scalar_lea.vmem %s2272_s0, %s1308_s18  ;;  %496 = vmatpush.bf16.msra.mxu0 %v1393_v14  ;;  %v1598_v25 = vld [vmem:[%s2274_s1] ss:$0 sm:$0xff] }
  0x1d   : > { %v429_v0 = vld [vmem:[%s1979_s27] sm:$0xff]  ;;  %vm524_vm6 = vcmp.le.s32.totalorder %v2011_v38, %v2009_v37 }
  0x1e   : > { %v433_v1 = vsel %vm432_vm0, %v429_v0, 0.0  ;;  %v1599_v28 = vld [vmem:[%s2275_s2] ss:$0 sm:$0xff] }
  0x1f   : > { %434 = vadd.xlane.f32.xlu0 %v433_v1 }
  0x20   : > { %v1601_v3 = vpop.eup %1600  ;;  %497 = vmatpush.bf16.msra.mxu0 %v1392_v15 }
  0x21   : > { %v437_v4 = vmul.f32 32.0, %v1601_v3  ;;  %vm441_vm1 = vweird.f32 %v1601_v3 }
  0x23   : > { %v438_v5 = vsub.f32 1.0, %v437_v4 }
  0x25   : > { %v439_v6 = vmul.f32 %v1601_v3, %v438_v5 }
  0x27   : > { %v440_v7 = vadd.f32 %v1601_v3, %v439_v6 }
  0x29   : > { %v1983_v8 = vsel %vm441_vm1, %v1601_v3, %v440_v7 }
  0x92   : > { %v435_v9 = vpop.xlane.xlu0 %434 }
  0x93   : > { %v443_v10 = vmul.f32 %v1983_v8, %v435_v9 }
  0x95   : > { %v444_v11 = vsub.f32 %v429_v0, %v443_v10 }
  0x97   : > { %v445_v12 = vmul.f32 %v444_v11, %v444_v11 }
  0x99   : > { %v446_v13 = vsel %vm432_vm0, %v445_v12, 0.0 }
  0x9a   : > { %447 = vadd.xlane.f32.xlu0 %v446_v13 }
 0x10d   : > { %v448_v16 = vpop.xlane.xlu0 %447 }
 0x10e   : > { %v449_v17 = vmul.f32 %v448_v16, %v1983_v8 }
 0x110   : > { %v450_v18 = vadd.f32 1e-05, %v449_v17 }
 0x112   : > { %1602 = vrsqrt.f32 %v450_v18  ;;  %vm457_vm3 = vweird.f32 %v450_v18 }
 0x118   : > { %v1603_v19 = vpop.eup %1602 }
 0x119   : > { %v452_v20 = vmul.f32 %v1603_v19, %v450_v18  ;;  %vm458_vm2 = vweird.f32 %v1603_v19 }
 0x11a   : > { %vm459_vm4 = vmor %vm457_vm3, %vm458_vm2 }
 0x11b   : > { %v453_v21 = vmul.f32 %v1603_v19, %v452_v20 }
 0x11d   : > { %v454_v22 = vmul.f32 0.5, %v453_v21 }
 0x11f   : > { %v455_v23 = vsub.f32 1.5, %v454_v22 }
 0x121   : > { %v456_v24 = vmul.f32 %v1603_v19, %v455_v23 }
 0x123   : > { %v460_v26 = vsel %vm459_vm4, %v1603_v19, %v456_v24 }
 0x124   : > { %v461_v27 = vmul.f32 %v460_v26, %v444_v11 }
 0x126   : > { %v465_v29 = vmul.f32 %v1598_v25, %v461_v27 }
 0x128   : > { %v469_v30 = vadd.f32 %v1599_v28, %v465_v29 }
 0x12a   : > { %v470_v31 = vpack.c.bf16 %v469_v30, %v469_v30 }
 0x12c   : > { %1317 = vmatmul.msk.bf16.vlgmr.msra.gmra.mxu0 %vm432_vm0, %v470_v31 }
 0x1a9   : > { %v499_v32 = vpop.f32.mrf.mxu0 }
 0x1aa   : > { %v503_v33 = vpack.c.bf16 %v499_v32, %v499_v32 }
 0x1ac   : > { %507 = vrot.lane.b32.xlu1 %v503_v33, %s1846_s19  ;;  %505 = vst.msk [vmem:[#allocation2] sm:$0xf] %vm504_vm5, %v503_v33 }
 0x1b1   : > { %v501_v34 = vpop.f32.mrf.mxu0 }
 0x1b3   : > { %v2007_v35 = vld [vmem:[#allocation2] sm:$0xf] }
 0x1b4   : > { %511 = vrot.lane.b32.xlu1 %v503_v33, %s1847_s20 }
 0x21e   : > { %v508_v39 = vpop.permute.xlu1 %507 }
 0x21f   : > { %510 = vst.msk [vmem:[#allocation3] sm:$0xf] %vm504_vm5, %v508_v39 }
 0x226   : > { %v512_v40 = vpop.permute.xlu1 %511 }
 0x227   : > { %514 = vst.msk [vmem:[#allocation4] sm:$0xf] %vm504_vm5, %v512_v40 }
 0x228 LB: >> { %s1318_s18 = sshll.u32 %s1795_s17, 3  ;;  %vm544_vm7 = vcmask 64512   ;;  %p564_p12 = scmp.lt.s32.totalorder %s1795_s17, 0  ;;  %vm590_vm10 = vcmask 1043456   ;;  %s1795_s17 = sphi %s2018_s17, %s529_s17   ;;  %v1791_v43 = vphi %v1789_v43, %v1790_v43   ;;  %v1787_v42 = vphi %v1785_v42, %v1786_v42   ;;  %v1783_v41 = vphi %v1781_v41, %v1782_v41  }
 0x229   : >> { %s536_s19 = sshra.s32 %s1318_s18, 3  ;;  %s529_s17 = sadd.s32 1, %s1795_s17  }
 0x22a   : >> { %s1319_s20 = sshll.u32 %s536_s19, 2  ;;  %p528_p13 = scmp.ge.s32.totalorder %s529_s17, 1 }
 0x22b   : >> { %s539_s28 = scalar_lea.vmem [#allocation3], %s1319_s20  ;;  %vm611_vm11 = vcmask (%p528_p13), 60416   ;;  %v2038_v10 = vmov (%p528_p13), 0.0   ;;  %v2040_v11 = vmov (%p528_p13), 0.0   ;;  %v2042_v12 = vmov (%p528_p13), -1e+30  }
 0x22c   : >> { %v540_v44 = vld [vmem:[%s539_s28] sm:$0xf]  ;;  %s565_s14 = scalar_select %p564_p12, 1, 0 }
 0x22d   : >> { %v549_v45 = vsel %vm544_vm7, %v540_v44, 0  ;;  %s542_s28 = scalar_lea.vmem [#allocation4], %s1319_s20 }
 0x22e   : >> { %558 = vmatpush.bf16.xpose.msra.mxu0 %v549_v45  ;;  %v566_v46 = vstv %s565_s14  ;;  %v543_v51 = vld [vmem:[%s542_s28] sm:$0xf]  ;;  %s2044_s14 = smov (%p528_p13), 0  }
 0x22f   : >> { %vm567_vm8 = vcmp.eq.s32.totalorder %v566_v46, 1  ;;  %v592_v52 = vsel %vm590_vm10, %v543_v51, 0 }
 0x230   : >> { %vm568_vm9 = vmor %vm524_vm6, %vm567_vm8  ;;  %601 = vmatpush.bf16.msra.mxu1 %v592_v52 }
 0x235   : >> { %1321 = vmatmul.msk.bf16.vlgmr.msra.gmra.mxu0 %vm544_vm7, %v2007_v35 }
 0x2b2   : >> { %v560_v47 = vpop.f32.mrf.mxu0 }
 0x2b3   : >> { %v569_v48 = vsel %vm568_vm9, %v560_v47, -1e+30 }
 0x2b4   : >> { %v570_v49 = vsel %vm544_vm7, %v569_v48, -inf }
 0x2b5   : >> { %571 = vmax.xlane.f32.xlu0 %v570_v49 }
 0x2ba   : >> { %v562_v50 = vpop.f32.mrf.mxu0 }
 0x328   : >> { %v572_v53 = vpop.xlane.xlu0 %571 }
 0x329   : >> { %v573_v54 = vmax.f32 %v1791_v43, %v572_v53  }
 0x32b   : >> { %v574_v55 = vsub.f32 %v1791_v43, %v573_v54  ;;  %v577_v56 = vsub.f32 %v569_v48, %v573_v54  ;;  %v1790_v43 = vmov %v573_v54  }
 0x32d   : >> { %v578_v57 = vmul.f32 1.442695, %v577_v56  ;;  %v575_v61 = vmul.f32 1.442695, %v574_v55 }
 0x32f   : >> { %1604 = vpow2.f32 %v578_v57 }
 0x330   : >> { %1606 = vpow2.f32 %v575_v61 }
 0x335   : >> { %v1605_v58 = vpop.eup %1604 }
 0x336   : >> { %v581_v59 = vsel %vm544_vm7, %v1605_v58, 0.0  ;;  %v586_v60 = vpack.c.bf16 %v1605_v58, %v1605_v58  ;;  %v1607_v62 = vpop.eup %1606 }
 0x337   : >> { %582 = vadd.xlane.f32.xlu0 %v581_v59  ;;  %v580_v63 = vmul.f32 %v1787_v42, %v1607_v62  ;;  %v585_v2 = vmul.f32 %v1783_v41, %v1607_v62 }
 0x338   : >> { %1322 = vmatmul.msk.bf16.vlgmr.msra.gmra.mxu1 %vm544_vm7, %v586_v60 }
 0x3aa   : >> { %v583_v0 = vpop.xlane.xlu0 %582 }
 0x3ab   : >> { %v584_v1 = vadd.f32 %v583_v0, %v580_v63  }
 0x3ad   : >> { %v1786_v42 = vmov %v584_v1   ;;  %1608 = vrcp.f32 (%p528_p13), %v584_v1 }
 0x3b3   : > { %v1609_v6 = vpop.eup (%p528_p13), %1608 }
 0x3b5   : >> { %v603_v3 = vpop.f32.mrf.mxu1 }
 0x3b6   : >> { %v607_v4 = vadd.f32 %v603_v3, %v585_v2  }
 0x3b8   : >> { %v1782_v41 = vmov %v607_v4   ;;  %v609_v7 = vmul.f32 (%p528_p13), %v1609_v6, %v607_v4 }
 0x3b9   : > { %531 = sbr.rel (!%p528_p13) target bundleno = 552 (0x228), region = 145 }
 0x3ba   : > { %v610_v9 = vpack.c.bf16 (%p528_p13), %v609_v7, %v609_v7 }
 0x3bc   : > { %612 = vst.msk [vmem:[#allocation5] sm:$0xf] (%p528_p13), %vm611_vm11, %v610_v9 }
 0x3bd   : >> { %v605_v5 = vpop.f32.mrf.mxu1 }
 0x3be LB: >> { %s1323_s17 = sshll.u32 %s1811_s14, 3  ;;  %s1848_s28 = smov 120   ;;  %v632_v16 = vunpack.c.l.b16 %v2007_v35  ;;  %s1811_s14 = sphi %s2044_s14, %s616_s14   ;;  %v1807_v12 = vphi %v2042_v12, %v2278_v12   ;;  %v1803_v11 = vphi %v2040_v11, %v2277_v11   ;;  %v1799_v10 = vphi %v2038_v10, %v2276_v10  }
 0x3bf   : >> { %s623_s18 = sshra.s32 %s1323_s17, 3  ;;  %p661_p0 = scmp.lt.s32.totalorder %s1811_s14, 0 }
 0x3c0   : >> { %s1324_s19 = sshll.u32 %s623_s18, 2  ;;  %v2054_v17 = vpack.c.b16 %v632_v16, %v632_v16  ;;  %s616_s14 = sadd.s32 1, %s1811_s14  }
 0x3c1   : >> { %s626_s20 = scalar_lea.vmem [#allocation3], %s1324_s19  ;;  %s629_s18 = scalar_lea.vmem [#allocation4], %s1324_s19 }
 0x3c2   : >> { %v627_v13 = vld [vmem:[%s626_s20] sm:$0xf]  ;;  %s662_s17 = scalar_select %p661_p0, 1, 0 }
 0x3c3   : >> { %v637_v14 = vunpack.c.l.b16 %v627_v13  ;;  %v630_v26 = vld [vmem:[%s629_s18] sm:$0xf]  ;;  %p615_p1 = scmp.ge.s32.totalorder %s616_s14, 1 }
 0x3c4   : >> { %v663_v21 = vstv %s662_s17  ;;  %v685_v27 = vunpack.c.l.b16 %v630_v26  ;;  %s1849_s19 = smov (%p615_p1), 8   ;;  %vm717_vm14 = vcmask (%p615_p1), 126016   ;;  %v2076_v55 = vmov (%p615_p1), 0.0   ;;  %s2082_s20 = smov (%p615_p1), 0  }
 0x3c5   : >> { %v638_v15 = vpack.c.b16 %v637_v14, %v637_v14  ;;  %vm664_vm12 = vcmp.eq.s32.totalorder %v663_v21, 1  ;;  %v2078_v56 = vmov (%p615_p1), 0.0   ;;  %v2080_v57 = vmov (%p615_p1), -1e+30  }
 0x3c6   : >> { %vm665_vm13 = vmor %vm524_vm6, %vm664_vm12  ;;  %v686_v28 = vpack.c.b16 %v685_v27, %v685_v27 }
 0x3c7   : >> { %639 = vrot.lane.b32.xlu0 %v638_v15, %s1848_s28 }
 0x3cf   : >> { %634 = vrot.lane.b32.xlu0 %v2054_v17, %s1848_s28 }
 0x439   : >> { %v640_v18 = vpop.permute.xlu0 %639 }
 0x43a   : >> { %v646_v19 = vsel %vm544_vm7, %v640_v18, 0 }
 0x43b   : >> { %655 = vmatpush.bf16.xpose.msra.mxu0 %v646_v19 }
 0x441   : >> { %v635_v20 = vpop.permute.xlu0 %634 }
 0x442   : >> { %1326 = vmatmul.msk.bf16.vlgmr.msra.gmra.mxu0 %vm544_vm7, %v635_v20 }
 0x4bf   : >> { %v657_v22 = vpop.f32.mrf.mxu0 }
 0x4c0   : >> { %v666_v23 = vsel %vm665_vm13, %v657_v22, -1e+30 }
 0x4c1   : >> { %v667_v24 = vsel %vm544_vm7, %v666_v23, -inf }
 0x4c2   : >> { %668 = vmax.xlane.f32.xlu1 %v667_v24 }
 0x4c7   : >> { %v659_v25 = vpop.f32.mrf.mxu0 }
 0x4db   : >> { %687 = vrot.lane.b32.xlu1 %v686_v28, %s1848_s28 }
 0x535   : >> { %v669_v29 = vpop.xlane.xlu1 %668 }
 0x536   : >> { %v670_v30 = vmax.f32 %v1807_v12, %v669_v29  }
 0x538   : >> { %v671_v31 = vsub.f32 %v1807_v12, %v670_v30  ;;  %v674_v32 = vsub.f32 %v666_v23, %v670_v30  ;;  %v2278_v12 = vmov %v670_v30 }
 0x53a   : >> { %v675_v33 = vmul.f32 1.442695, %v674_v32  ;;  %v672_v42 = vmul.f32 1.442695, %v671_v31 }
 0x53c   : >> { %1610 = vpow2.f32 %v675_v33 }
 0x53d   : >> { %1612 = vpow2.f32 %v672_v42 }
 0x542   : >> { %v1611_v34 = vpop.eup %1610 }
 0x543   : >> { %v678_v36 = vsel %vm544_vm7, %v1611_v34, 0.0  ;;  %v683_v41 = vpack.c.bf16 %v1611_v34, %v1611_v34  ;;  %v1613_v43 = vpop.eup %1612 }
 0x544   : >> { %679 = vadd.xlane.f32.xlu2 %v678_v36  ;;  %v677_v44 = vmul.f32 %v1803_v11, %v1613_v43  ;;  %v682_v47 = vmul.f32 %v1799_v10, %v1613_v43 }
 0x54d   : >> { %v688_v39 = vpop.permute.xlu1 %687 }
 0x54e   : >> { %v694_v40 = vsel %vm590_vm10, %v688_v39, 0 }
 0x54f   : >> { %703 = vmatpush.bf16.msra.mxu1 %v694_v40 }
 0x552   : >> { %1327 = vmatmul.msk.bf16.vlgmr.msra.gmra.mxu1 %vm544_vm7, %v683_v41 }
 0x5b7   : >> { %v680_v45 = vpop.xlane.xlu2 %679 }
 0x5b8   : >> { %v681_v46 = vadd.f32 %v680_v45, %v677_v44  }
 0x5ba   : >> { %v2277_v11 = vmov %v681_v46  ;;  %1614 = vrcp.f32 (%p615_p1), %v681_v46 }
 0x5c0   : > { %v1615_v51 = vpop.eup (%p615_p1), %1614 }
 0x5cf   : >> { %v705_v48 = vpop.f32.mrf.mxu1 }
 0x5d0   : >> { %v709_v49 = vadd.f32 %v705_v48, %v682_v47  }
 0x5d2   : >> { %v2276_v10 = vmov %v709_v49  ;;  %v711_v52 = vmul.f32 (%p615_p1), %v1615_v51, %v709_v49 }
 0x5d3   : > { %618 = sbr.rel (!%p615_p1) target bundleno = 958 (0x3be), region = 156 }
 0x5d4   : > { %v712_v53 = vpack.c.bf16 (%p615_p1), %v711_v52, %v711_v52 }
 0x5d6   : > { %714 = vrot.lane.b32.xlu0 (%p615_p1), %v712_v53, %s1849_s19 }
 0x5d7   : >> { %v707_v50 = vpop.f32.mrf.mxu1 }
 0x648   : > { %v715_v54 = vpop.permute.xlu0 %714 }
 0x649   : > { %718 = vst.msk [vmem:[#allocation5] sm:$0xf] %vm717_vm14, %v715_v54 }
 0x64a LB: >> { %s1328_s14 = sshll.u32 %s1827_s20, 3  ;;  %s1850_s19 = smov 112   ;;  %s1827_s20 = sphi %s2082_s20, %s722_s20   ;;  %v1823_v57 = vphi %v2080_v57, %v2281_v57   ;;  %v1819_v56 = vphi %v2078_v56, %v2280_v56   ;;  %v1815_v55 = vphi %v2076_v55, %v2279_v55  }
 0x64b   : >> { %s729_s28 = sshra.s32 %s1328_s14, 3  ;;  %p767_p2 = scmp.lt.s32.totalorder %s1827_s20, 0 }
 0x64c   : >> { %s1329_s17 = sshll.u32 %s729_s28, 2  ;;  %s722_s20 = sadd.s32 1, %s1827_s20  }
 0x64d   : >> { %s732_s18 = scalar_lea.vmem [#allocation3], %s1329_s17  ;;  %s735_s14 = scalar_lea.vmem [#allocation4], %s1329_s17 }
 0x64e   : >> { %v733_v35 = vld [vmem:[%s732_s18] sm:$0xf]  ;;  %s768_s0 = scalar_select %p767_p2, 1, 0 }
 0x64f   : >> { %v743_v58 = vunpack.c.l.b16 %v733_v35  ;;  %v736_v4 = vld [vmem:[%s735_s14] sm:$0xf]  ;;  %p721_p3 = scmp.ge.s32.totalorder %s722_s20, 1 }
 0x650   : >> { %v769_v63 = vstv %s768_s0  ;;  %v791_v5 = vunpack.c.l.b16 %v736_v4  ;;  %s1851_s0 = smov (%p721_p3), 16   ;;  %vm823_vm2 = vcmask (%p721_p3), 191616   ;;  %v2111_v32 = vmov (%p721_p3), 0.0   ;;  %s2117_s28 = smov (%p721_p3), 0  }
 0x651   : >> { %v744_v59 = vpack.c.b16 %v743_v58, %v743_v58  ;;  %vm770_vm15 = vcmp.eq.s32.totalorder %v769_v63, 1  ;;  %v2113_v33 = vmov (%p721_p3), 0.0   ;;  %v2115_v34 = vmov (%p721_p3), -1e+30  }
 0x652   : >> { %vm771_vm1 = vmor %vm524_vm6, %vm770_vm15  ;;  %v792_v6 = vpack.c.b16 %v791_v5, %v791_v5 }
 0x653   : >> { %745 = vrot.lane.b32.xlu0 %v744_v59, %s1850_s19 }
 0x65b   : >> { %740 = vrot.lane.b32.xlu0 %v2054_v17, %s1850_s19 }
 0x6c5   : >> { %v746_v60 = vpop.permute.xlu0 %745 }
 0x6c6   : >> { %v752_v61 = vsel %vm544_vm7, %v746_v60, 0 }
 0x6c7   : >> { %761 = vmatpush.bf16.xpose.msra.mxu0 %v752_v61 }
 0x6cd   : >> { %v741_v62 = vpop.permute.xlu0 %740 }
 0x6ce   : >> { %1331 = vmatmul.msk.bf16.vlgmr.msra.gmra.mxu0 %vm544_vm7, %v741_v62 }
 0x74b   : >> { %v763_v0 = vpop.f32.mrf.mxu0 }
 0x74c   : >> { %v772_v1 = vsel %vm771_vm1, %v763_v0, -1e+30 }
 0x74d   : >> { %v773_v2 = vsel %vm544_vm7, %v772_v1, -inf }
 0x74e   : >> { %774 = vmax.xlane.f32.xlu1 %v773_v2 }
 0x753   : >> { %v765_v3 = vpop.f32.mrf.mxu0 }
 0x767   : >> { %793 = vrot.lane.b32.xlu1 %v792_v6, %s1850_s19 }
 0x7c1   : >> { %v775_v7 = vpop.xlane.xlu1 %774 }
 0x7c2   : >> { %v776_v9 = vmax.f32 %v1823_v57, %v775_v7  }
 0x7c4   : >> { %v777_v10 = vsub.f32 %v1823_v57, %v776_v9  ;;  %v780_v11 = vsub.f32 %v772_v1, %v776_v9  ;;  %v2281_v57 = vmov %v776_v9 }
 0x7c6   : >> { %v781_v12 = vmul.f32 1.442695, %v780_v11  ;;  %v778_v19 = vmul.f32 1.442695, %v777_v10 }
 0x7c8   : >> { %1616 = vpow2.f32 %v781_v12 }
 0x7c9   : >> { %1618 = vpow2.f32 %v778_v19 }
 0x7ce   : >> { %v1617_v13 = vpop.eup %1616 }
 0x7cf   : >> { %v784_v14 = vsel %vm544_vm7, %v1617_v13, 0.0  ;;  %v789_v18 = vpack.c.bf16 %v1617_v13, %v1617_v13  ;;  %v1619_v20 = vpop.eup %1618 }
 0x7d0   : >> { %785 = vadd.xlane.f32.xlu2 %v784_v14  ;;  %v783_v21 = vmul.f32 %v1819_v56, %v1619_v20  ;;  %v788_v24 = vmul.f32 %v1815_v55, %v1619_v20 }
 0x7d9   : >> { %v794_v15 = vpop.permute.xlu1 %793 }
 0x7da   : >> { %v800_v16 = vsel %vm590_vm10, %v794_v15, 0 }
 0x7db   : >> { %809 = vmatpush.bf16.msra.mxu1 %v800_v16 }
 0x7de   : >> { %1332 = vmatmul.msk.bf16.vlgmr.msra.gmra.mxu1 %vm544_vm7, %v789_v18 }
 0x843   : >> { %v786_v22 = vpop.xlane.xlu2 %785 }
 0x844   : >> { %v787_v23 = vadd.f32 %v786_v22, %v783_v21  }
 0x846   : >> { %v2280_v56 = vmov %v787_v23  ;;  %1620 = vrcp.f32 (%p721_p3), %v787_v23 }
 0x84c   : > { %v1621_v28 = vpop.eup (%p721_p3), %1620 }
 0x85b   : >> { %v811_v25 = vpop.f32.mrf.mxu1 }
 0x85c   : >> { %v815_v26 = vadd.f32 %v811_v25, %v788_v24  }
 0x85e   : >> { %v2279_v55 = vmov %v815_v26  ;;  %v817_v29 = vmul.f32 (%p721_p3), %v1621_v28, %v815_v26 }
 0x85f   : > { %724 = sbr.rel (!%p721_p3) target bundleno = 1610 (0x64a), region = 167 }
 0x860   : > { %v818_v30 = vpack.c.bf16 (%p721_p3), %v817_v29, %v817_v29 }
 0x862   : > { %820 = vrot.lane.b32.xlu0 (%p721_p3), %v818_v30, %s1851_s0 }
 0x863   : >> { %v813_v27 = vpop.f32.mrf.mxu1 }
 0x8d4   : > { %v821_v31 = vpop.permute.xlu0 %820 }
 0x8d5   : > { %824 = vst.msk [vmem:[#allocation5] sm:$0xf] %vm823_vm2, %v821_v31 }
 0x8d6 LB: >> { %s1333_s20 = sshll.u32 %s1843_s28, 3  ;;  %s1852_s14 = smov 104   ;;  %s1843_s28 = sphi %s2117_s28, %s828_s28   ;;  %v1839_v34 = vphi %v2115_v34, %v2284_v34   ;;  %v1835_v33 = vphi %v2113_v33, %v2283_v33   ;;  %v1831_v32 = vphi %v2111_v32, %v2282_v32  }
 0x8d7   : >> { %s835_s17 = sshra.s32 %s1333_s20, 3  ;;  %p873_p5 = scmp.lt.s32.totalorder %s1843_s28, 0 }
 0x8d8   : >> { %s1334_s18 = sshll.u32 %s835_s17, 2  ;;  %s828_s28 = sadd.s32 1, %s1843_s28  }
 0x8d9   : >> { %s838_s19 = scalar_lea.vmem [#allocation3], %s1334_s18  ;;  %s841_s20 = scalar_lea.vmem [#allocation4], %s1334_s18 }
 0x8da   : >> { %v839_v36 = vld [vmem:[%s838_s19] sm:$0xf]  ;;  %s874_s0 = scalar_select %p873_p5, 1, 0 }
 0x8db   : >> { %v849_v39 = vunpack.c.l.b16 %v839_v36  ;;  %v842_v49 = vld [vmem:[%s841_s20] sm:$0xf]  ;;  %p827_p6 = scmp.ge.s32.totalorder %s828_s28, 1 }
 0x8dc   : >> { %v875_v44 = vstv %s874_s0  ;;  %v897_v50 = vunpack.c.l.b16 %v842_v49  ;;  %s1853_s17 = smov (%p827_p6), 24   ;;  %v1395_v10 = vld [vmem:[%s2256_s4 + $0x8] sm:$0xff] (%p827_p6)  ;;  %v1394_v11 = vld [vmem:[%s2256_s4] sm:$0xff] (%p827_p6)  ;;  %vm929_vm5 = vcmask (%p827_p6), 257216   ;;  %v1405_v26 = vld [vmem:[%s2262_s10 + $0x38] sm:$0xff] (%p827_p6)  ;;  %s1389_s1 = sshll.u32 (%p827_p6), %s1771_s24, 3 }
 0x8dd   : >> { %v850_v40 = vpack.c.b16 %v849_v39, %v849_v39  ;;  %vm876_vm3 = vcmp.eq.s32.totalorder %v875_v44, 1  ;;  %v1626_v38 = vld [vmem:[%s2257_s5] ss:$0 sm:$0xff] (%p827_p6)  ;;  %v1397_v24 = vld [vmem:[%s2260_s8 + $0x8] sm:$0xff] (%p827_p6)  ;;  %1126 = vmatpush.bf16.msra.mxu2 (%p827_p6), %v1405_v26  ;;  %v1404_v29 = vld [vmem:[%s2262_s10 + $0x30] sm:$0xff] (%p827_p6)  ;;  %s1153_s19 = scalar_lea.hbm (%p827_p6), %s2264_s12, %s1389_s1  ;;  %s2287_s20 = sand.u32 (%p827_p6), 1, %s1763_s22  }
 0x8de   : >> { %vm877_vm4 = vmor %vm524_vm6, %vm876_vm3  ;;  %v898_v51 = vpack.c.b16 %v897_v50, %v897_v50  ;;  %v1396_v25 = vld [vmem:[%s2260_s8] sm:$0xff] (%p827_p6)  ;;  %v1400_v49 = vld [vmem:[%s2262_s10 + $0x10] sm:$0xff] (%p827_p6)  ;;  %s1157_s28 = sshll.u32 (%p827_p6), %s1153_s19, 4  ;;  %s1142_s2 = scalar_lea.sflag (%p827_p6), [#allocation7], %s2287_s20  ;;  %s1158_s28 = int_to_ptr.hbm [resolvable:$true] %s1157_s28 }
 0x8df   : >> { %851 = vrot.lane.b32.xlu0 %v850_v40, %s1852_s14  ;;  %v1399_v50 = vld [vmem:[%s2262_s10 + $0x8] sm:$0xff] (%p827_p6)  ;;  %s1657_s18 = scalar_lea.hbm (%p827_p6), %s2264_s12, 16 }
 0x8e1   : > { %1127 = vmatpush.bf16.msra.mxu2 (%p827_p6), %v1404_v29 }
 0x8e7   : >> { %846 = vrot.lane.b32.xlu0 %v2054_v17, %s1852_s14  ;;  %v932_v17 = vld [vmem:[%s1979_s27] sm:$0xff] (%p827_p6) }
 0x951   : >> { %v852_v41 = vpop.permute.xlu0 %851 }
 0x952   : >> { %v858_v42 = vsel %vm544_vm7, %v852_v41, 0 }
 0x953   : >> { %867 = vmatpush.bf16.xpose.msra.mxu0 %v858_v42  ;;  %v1628_v42 = vld [vmem:[%s2259_s7] ss:$0 sm:$0xff] (%p827_p6) }
 0x959   : >> { %v847_v43 = vpop.permute.xlu0 %846 }
 0x95a   : >> { %1336 = vmatmul.msk.bf16.vlgmr.msra.gmra.mxu0 %vm544_vm7, %v847_v43 }
 0x95b   : > { %964 = vmatpush.bf16.msra.mxu0 (%p827_p6), %v1395_v10 }
 0x95f   : > { %965 = vmatpush.bf16.msra.mxu0 (%p827_p6), %v1394_v11 }
 0x9d7   : >> { %v869_v45 = vpop.f32.mrf.mxu0 }
 0x9d8   : >> { %v878_v46 = vsel %vm877_vm4, %v869_v45, -1e+30 }
 0x9d9   : >> { %v879_v47 = vsel %vm544_vm7, %v878_v46, -inf }
 0x9da   : >> { %880 = vmax.xlane.f32.xlu1 %v879_v47  ;;  %v1402_v47 = vld [vmem:[%s2262_s10 + $0x20] sm:$0xff] (%p827_p6) }
 0x9df   : >> { %v871_v48 = vpop.f32.mrf.mxu0 }
 0x9e0   : > { %v1401_v48 = vld [vmem:[%s2262_s10 + $0x18] sm:$0xff] (%p827_p6) }
 0x9f3   : >> { %899 = vrot.lane.b32.xlu1 %v898_v51, %s1852_s14  ;;  %v1398_v51 = vld [vmem:[%s2262_s10] sm:$0xff] (%p827_p6)  ;;  %s2285_s14 = scalar_lea.vmem (%p827_p6), [#allocation6], %s1990_s30 }
 0x9f4   : > { %s1155_s0 = sshll.u32 (%p827_p6), %s2285_s14, 4  ;;  %s2286_s24 = smov (%p827_p6), %s2285_s14  ;;  %s1156_s0 = int_to_ptr.vmem [resolvable:$true] %s1155_s0 }
 0xa4d   : >> { %v881_v52 = vpop.xlane.xlu1 %880 }
 0xa4e   : >> { %v882_v53 = vmax.f32 %v1839_v34, %v881_v52   ;;  %v1629_v52 = vld [vmem:[%s2261_s9] ss:$0 sm:$0xff] (%p827_p6) }
 0xa50   : >> { %v883_v54 = vsub.f32 %v1839_v34, %v882_v53  ;;  %v886_v55 = vsub.f32 %v878_v46, %v882_v53  ;;  %v2284_v34 = vmov %v882_v53  ;;  %v1403_v46 = vld [vmem:[%s2262_s10 + $0x28] sm:$0xff] (%p827_p6) }
 0xa51   : > { %1128 = vmatpush.bf16.msra.mxu2 (%p827_p6), %v1403_v46 }
 0xa52   : >> { %v887_v56 = vmul.f32 1.442695, %v886_v55  ;;  %v884_v61 = vmul.f32 1.442695, %v883_v54 }
 0xa54   : >> { %1622 = vpow2.f32 %v887_v56 }
 0xa55   : >> { %1624 = vpow2.f32 %v884_v61  ;;  %1129 = vmatpush.bf16.msra.mxu2 (%p827_p6), %v1402_v47 }
 0xa59   : > { %1130 = vmatpush.bf16.msra.mxu2 (%p827_p6), %v1401_v48 }
 0xa5a   : >> { %v1623_v57 = vpop.eup %1622 }
 0xa5b   : >> { %v890_v35 = vsel %vm544_vm7, %v1623_v57, 0.0  ;;  %v895_v60 = vpack.c.bf16 %v1623_v57, %v1623_v57  ;;  %v1625_v62 = vpop.eup %1624 }
 0xa5c   : >> { %891 = vadd.xlane.f32.xlu2 %v890_v35  ;;  %v889_v63 = vmul.f32 %v1835_v33, %v1625_v62  ;;  %v894_v2 = vmul.f32 %v1831_v32, %v1625_v62 }
 0xa5d   : > { %1131 = vmatpush.bf16.msra.mxu2 (%p827_p6), %v1400_v49 }
 0xa61   : > { %1132 = vmatpush.bf16.msra.mxu2 (%p827_p6), %v1399_v50 }
 0xa65   : >> { %v900_v58 = vpop.permute.xlu1 %899  ;;  %1133 = vmatpush.bf16.msra.mxu2 (%p827_p6), %v1398_v51 }
 0xa66   : >> { %v906_v59 = vsel %vm590_vm10, %v900_v58, 0 }
 0xa67   : >> { %915 = vmatpush.bf16.msra.mxu1 %v906_v59 }
 0xa6a   : >> { %1337 = vmatmul.msk.bf16.vlgmr.msra.gmra.mxu1 %vm544_vm7, %v895_v60 }
 0xa6b   : > { %1041 = vmatpush.bf16.msra.mxu1 (%p827_p6), %v1397_v24 }
 0xa6f   : > { %1042 = vmatpush.bf16.msra.mxu1 (%p827_p6), %v1396_v25 }
 0xacf   : >> { %v892_v0 = vpop.xlane.xlu2 %891 }
 0xad0   : >> { %v893_v1 = vadd.f32 %v892_v0, %v889_v63  }
 0xad2   : >> { %v2283_v33 = vmov %v893_v1  ;;  %1631 = vrcp.f32 (%p827_p6), %v893_v1  ;;  %v1630_v1 = vld [vmem:[%s2263_s11] ss:$0 sm:$0xff] (%p827_p6) }
 0xad8   : > { %v1632_v6 = vpop.eup (%p827_p6), %1631 }
 0xae7   : >> { %v917_v3 = vpop.f32.mrf.mxu1 }
 0xae8   : >> { %v921_v4 = vadd.f32 %v917_v3, %v894_v2  }
 0xaea   : >> { %v2282_v32 = vmov %v921_v4  ;;  %v923_v7 = vmul.f32 (%p827_p6), %v1632_v6, %v921_v4 }
 0xaeb   : > { %830 = sbr.rel (!%p827_p6) target bundleno = 2262 (0x8d6), region = 178 }
 0xaec   : > { %v924_v9 = vpack.c.bf16 (%p827_p6), %v923_v7, %v923_v7 }
 0xaee   : > { %926 = vrot.lane.b32.xlu0 (%p827_p6), %v924_v9, %s1853_s17  ;;  %s1651_s17 = sshra.s32 (%p827_p6), %s1158_s28, 4  ;;  %s1652_s17 = int_to_ptr.hbm [resolvable:$true] %s1651_s17 }
 0xaef   : >> { %v919_v5 = vpop.f32.mrf.mxu1  ;;  %s1653_s3 = scalar_lea.hbm (%p827_p6), %s1652_s17, 8  ;;  %p1658_p11 = scmp.lt.s32.totalorder (%p827_p6), %s1652_s17, %s2264_s12 }
 0xaf0   : > { %p1654_p7 = scmp.ne.s32.totalorder %s1652_s17, %s1653_s3  ;;  %p1659_p12 = scmp.lt.s32.totalorder %s1657_s18, %s1653_s3 }
 0xaf2   : > { %p1655_p9 = pnand %p1654_p7, %p1959_p4  ;;  %p1660_p13 = por %p1659_p12, %p1658_p11 }
 0xaf4   : > { %p1656_p10 = pneg %p1655_p9 }
 0xaf6   : > { %p1661_p0 = pnand %p1660_p13, %p1656_p10 }
 0xb60   : > { %v927_v12 = vpop.permute.xlu0 %926 }
 0xb61   : > { %930 = vst.msk [vmem:[#allocation5] sm:$0xf] %vm929_vm5, %v927_v12 }
 0xb68   : > { %v933_v37 = vld [vmem:[#allocation5] sm:$0xf] }
 0xb69   : > { %1346 = vmatmul.msk.bf16.vlgmr.msra.gmra.mxu0 %vm432_vm0, %v933_v37 }
 0xbe6   : > { %v967_v13 = vpop.f32.mrf.mxu0 }
 0xbe7   : > { %v968_v14 = vadd.f32 %v1626_v38, %v967_v13 }
 0xbe9   : > { %v2157_v15 = vadd.f32 %v968_v14, %v932_v17 }
 0xbeb   : > { %v974_v16 = vsel %vm432_vm0, %v2157_v15, 0.0 }
 0xbec   : > { %975 = vadd.xlane.f32.xlu0 %v974_v16 }
 0xbee   : > { %v969_v18 = vpop.f32.mrf.mxu0 }
 0xc5f   : > { %v976_v19 = vpop.xlane.xlu0 %975 }
 0xc60   : > { %v984_v20 = vmul.f32 %v976_v19, %v1983_v8 }
 0xc62   : > { %v985_v21 = vsub.f32 %v2157_v15, %v984_v20 }
 0xc64   : > { %v986_v22 = vmul.f32 %v985_v21, %v985_v21 }
 0xc66   : > { %v987_v23 = vsel %vm432_vm0, %v986_v22, 0.0 }
 0xc67   : > { %988 = vadd.xlane.f32.xlu1 %v987_v23 }
 0xcda   : > { %v989_v27 = vpop.xlane.xlu1 %988 }
 0xcdb   : > { %v990_v28 = vmul.f32 %v989_v27, %v1983_v8  ;;  %v1627_v8 = vld [vmem:[%s2258_s6] ss:$0 sm:$0xff] }
 0xcdd   : > { %v991_v30 = vadd.f32 1e-05, %v990_v28 }
 0xcdf   : > { %1633 = vrsqrt.f32 %v991_v30  ;;  %vm998_vm7 = vweird.f32 %v991_v30 }
 0xce5   : > { %v1634_v31 = vpop.eup %1633 }
 0xce6   : > { %v993_v32 = vmul.f32 %v1634_v31, %v991_v30  ;;  %vm999_vm6 = vweird.f32 %v1634_v31 }
 0xce7   : > { %vm1000_vm8 = vmor %vm998_vm7, %vm999_vm6 }
 0xce8   : > { %v994_v33 = vmul.f32 %v1634_v31, %v993_v32 }
 0xcea   : > { %v995_v34 = vmul.f32 0.5, %v994_v33 }
 0xcec   : > { %v996_v36 = vsub.f32 1.5, %v995_v34 }
 0xcee   : > { %v997_v39 = vmul.f32 %v1634_v31, %v996_v36 }
 0xcf0   : > { %v1001_v40 = vsel %vm1000_vm8, %v1634_v31, %v997_v39 }
 0xcf1   : > { %v1002_v41 = vmul.f32 %v1001_v40, %v985_v21 }
 0xcf3   : > { %v1006_v43 = vmul.f32 %v1627_v8, %v1002_v41 }
 0xcf5   : > { %v1010_v44 = vadd.f32 %v1628_v42, %v1006_v43 }
 0xcf7   : > { %v1011_v45 = vpack.c.bf16 %v1010_v44, %v1010_v44 }
 0xcf9   : > { %1355 = vmatmul.msk.bf16.vlgmr.msra.gmra.mxu1 %vm432_vm0, %v1011_v45 }
 0xd76   : > { %v1044_v53 = vpop.f32.mrf.mxu1 }
 0xd77   : > { %v1045_v54 = vadd.f32 %v1629_v52, %v1044_v53 }
 0xd79   : > { %v1049_v55 = vmul.f32 0.044715, %v1045_v54  ;;  %v1048_v61 = vmul.f32 0.5, %v1045_v54 }
 0xd7b   : > { %v1050_v56 = vmul.f32 %v1049_v55, %v1045_v54 }
 0xd7d   : > { %v1051_v57 = vmul.f32 %v1050_v56, %v1045_v54 }
 0xd7e   : > { %v1046_v35 = vpop.f32.mrf.mxu1 }
 0xd7f   : > { %v1052_v58 = vadd.f32 %v1051_v57, %v1045_v54 }
 0xd81   : > { %v1053_v59 = vmul.f32 0.7978846, %v1052_v58 }
 0xd83   : > { %1635 = vtanh.f32 %v1053_v59 }
 0xd89   : > { %v1636_v60 = vpop.eup %1635 }
 0xd8a   : > { %v1055_v62 = vadd.f32 1.0, %v1636_v60 }
 0xd8c   : > { %v1056_v63 = vmul.f32 %v1055_v62, %v1048_v61 }
 0xd8e   : > { %v1057_v0 = vpack.c.bf16 %v1056_v63, %v1056_v63 }
 0xd90   : > { %1134 = vmatmul.bf16.vlgmr.msra.gmra.mxu2 %v1057_v0 }
 0xe13   : > { %v1135_v2 = vpop.f32.mrf.mxu2 }
 0xe14   : > { %v1136_v3 = vadd.f32 %v1630_v1, %v1135_v2 }
 0xe16   : > { %v1139_v4 = vadd.f32 %v1136_v3, %v2157_v15 }
 0xe18   : > { %1140 = vst.msk [vmem:[%s2286_s24] sm:$0xff] %vm432_vm0, %v1139_v4 }
 0xe19   : > { %1664 = shalt.err (!%p1661_p0)
}
 0xe1a   : > { %1406 = dma.vmem_to_hbm [thread:$0]  (%p1959_p4), %s1156_s0, 128, %s1158_s28, %s1142_s2  }
 0xe1b   : > { %v1137_v5 = vpop.f32.mrf.mxu2 }
 0xe1c PF: > { %p1412_p1 = scmp.ge.s32.totalorder %s1779_s26, 2  ;;  %s1169_s30 = sand.u32 1, %s1759_s21  }
 0xe1d   : > { %s1170_s24 = scalar_lea.sflag [#allocation7], %s1169_s30 }
 0xe1e   : > { %p1409_p2 = pnand %p1412_p1, %p1966_p8 }
 0xe20   : > { %p1410_p3 = pneg %p1409_p2 }
 0xe22   : > { %1754 = dma.done.wait (%p1410_p3), %s1170_s24, 128  }
 0xe23   : > { %1756 = vsyncadd (%p1410_p3), %s1170_s24, 4294967168  ;;  %s25_s26 = sadd.s32 1, %s1779_s26   ;;  %s2288_s21 = smov %s1763_s22 }
 0xe24   : > { %p22_p5 = scmp.ge.s32.totalorder %s25_s26, 4   ;;  %s2289_s22 = smov %s1767_s23 }
 0xe25   : > { %s2290_s23 = smov %s1972_s16  ;;  %s2291_s24 = smov %s1775_s25 }
 0xe26   : > { %s2292_s25 = smov %s2294_s29  ;;  %24 = sbr.rel (!%p22_p5) target bundleno = 9 (0x9), region = 189 }
 0xe2b   :  { %1176 = vsyncpa [#allocation7], 1 }
 0xe2c   :  { %1178 = vsyncpa [#allocation7 + $0x1], 1 }

</bundles_post_ra>
